<compile_context>
chip_gen: v5e
topology: v5e:2x2
jax: 0.10.0
libtpu: 0.0.40
codegen_flags: <defaults>
</compile_context>

<pallas_src>
import functools

import jax
import jax.numpy as jnp
from jax.experimental import pallas as pl
from jax.experimental.pallas import tpu as pltpu


def _round_up(x, m):
    return ((x + m - 1) // m) * m


def _edge_encoder_kernel(carrier_ref, w1_ref, b1_ref, w2_ref, b2_ref, emb_ref, o_ref):
    # carrier_ref: (2, R, F) int32   plane 0 = bitcast(edge_length), plane 1 = edge_type
    # w1_ref     : (F, FH)           kron(I_F, w1)
    # b1_ref     : (1, FH)
    # w2_ref     : (FH, FH)          block-diagonal (F copies of w2)
    # b2_ref     : (1, FH)
    # emb_ref    : (F*D_pad, FH)     placed embedding table for the fused one-hot gather
    # o_ref      : (R, FH)           lane-dense output
    F, FH = w1_ref.shape
    R = carrier_ref.shape[1]
    D_pad = emb_ref.shape[0] // F

    el = pltpu.bitcast(carrier_ref[0], jnp.float32)       # (R, F) folded edge lengths
    et = carrier_ref[1]                                   # (R, F) folded edge types (int32)

    # Folded Linear(1 -> H): (R, F) @ (F, FH) on the MXU, then ReLU.
    h = jnp.dot(el, w1_ref[...], preferred_element_type=jnp.float32) + b1_ref[...]
    h = jnp.maximum(h, 0.0)

    # Folded Linear(H -> H): block-diagonal weights keep the F folded edges independent.
    d_emb = jnp.dot(h, w2_ref[...], preferred_element_type=jnp.float32) + b2_ref[...]

    # Fused embedding gather: a single one-hot matmul with K = F * D_pad.
    # Each 128-lane-aligned segment k compares against its own edge-type column; the
    # concatenation is tile-aligned so it is pure layout, no accumulation adds needed.
    d_iota = jax.lax.broadcasted_iota(jnp.int32, (R, D_pad), 1)
    onehot = jnp.concatenate(
        [(et[:, k:k + 1] == d_iota).astype(jnp.float32) for k in range(F)], axis=1)
    edge_attr = jnp.dot(onehot, emb_ref[...], preferred_element_type=jnp.float32)  # (R, FH)

    o_ref[...] = (d_emb * edge_attr).astype(o_ref.dtype)


def prepare_params(params):
    """One-time (outside jit-per-call) transform of module parameters into the lane-dense
    folded layout consumed by the kernel.  Call once per parameter set and reuse."""
    w1, b1, w2, b2, emb = (
        params["w1"], params["b1"], params["w2"], params["b2"], params["emb"]
    )
    H = w1.shape[1]
    D = emb.shape[0]
    # Fold factor: how many edges share one 128-lane row.
    # NOTE: if H does not divide 128 this falls back to F=1 (correct but not lane-dense;
    # stores are masked and the kernel runs noticeably slower).
    F = 128 // H if (H <= 128 and 128 % H == 0) else 1
    FH = F * H
    D_pad = _round_up(D, 128)

    eye_f = jnp.eye(F, dtype=jnp.float32)
    w1_blk = jnp.kron(eye_f, w1.astype(jnp.float32))                 # (F, FH)
    w2_blk = jnp.kron(eye_f, w2.astype(jnp.float32))                 # (FH, FH) block-diag
    b1_blk = jnp.tile(b1.astype(jnp.float32).reshape(1, H), (1, F))  # (1, FH)
    b2_blk = jnp.tile(b2.astype(jnp.float32).reshape(1, H), (1, F))  # (1, FH)

    # Fused gather table: rows [k*D_pad, k*D_pad+D) x cols [k*H, (k+1)*H) hold emb; zeros
    # elsewhere, so one (R, F*D_pad) one-hot matmul gathers all F fold slots at once.
    emb_cat = jnp.zeros((F * D_pad, FH), jnp.float32)
    for k in range(F):
        emb_cat = emb_cat.at[k * D_pad:k * D_pad + D, k * H:(k + 1) * H].set(
            emb.astype(jnp.float32))

    return {"w1_blk": w1_blk, "b1_blk": b1_blk, "w2_blk": w2_blk,
            "b2_blk": b2_blk, "emb_cat": emb_cat}


@functools.partial(jax.jit, static_argnames=("tile_e", "out_dtype"))
def mlp_edge_encoder(edge_length, edge_type, prepared, tile_e=8192, out_dtype=jnp.float32):
    """
    edge_length: (E, 1) float32
    edge_type:   (E,)   integer
    prepared:    output of prepare_params (computed once, NOT per call)
    returns:     (E, H) out_dtype
    """
    w1_blk = prepared["w1_blk"]
    b1_blk = prepared["b1_blk"]
    w2_blk = prepared["w2_blk"]
    b2_blk = prepared["b2_blk"]
    emb_cat = prepared["emb_cat"]

    F, FH = w1_blk.shape
    H = FH // F
    D_pad = emb_cat.shape[0] // F

    E = edge_length.shape[0]
    pack = 8 * F                       # edges per (8, 128) vreg tile of the folded layout
    E_pack = _round_up(E, pack)        # minimal zero-pad so partially valid rows are clean
    rows = E_pack // F

    # Tile sizing: multiple of pack; cap so the grid keeps >= ~4 steps when E allows it
    # (>= 2 pipelined steps per TensorCore on v7x with the "parallel" axis).
    tile_e = max(pack, (int(tile_e) // pack) * pack)
    target_tile = _round_up(pl.cdiv(E_pack, 4), pack)
    tile_e = min(tile_e, max(pack, target_tile))
    R = tile_e // F
    grid = (pl.cdiv(rows, R),)         # last tile may be partial: OOB reads are discarded rows

    # Single merged carrier: plane 0 = edge_length bits, plane 1 = edge_type (one DMA stream,
    # one padded VMEM buffer instead of two; the small zero-pad is absorbed into this build).
    el = edge_length.reshape(-1).astype(jnp.float32)
    et = edge_type.reshape(-1).astype(jnp.int32)
    el_bits = jax.lax.bitcast_convert_type(el, jnp.int32)
    pad = E_pack - E
    if pad:
        el_bits = jnp.pad(el_bits, (0, pad))
        et = jnp.pad(et, (0, pad))
    carrier = jnp.stack([el_bits.reshape(rows, F), et.reshape(rows, F)], axis=0)  # (2, rows, F)

    out_folded = pl.pallas_call(
        _edge_encoder_kernel,
        out_shape=jax.ShapeDtypeStruct((rows, FH), out_dtype),
        grid_spec=pltpu.PrefetchScalarGridSpec(
            num_scalar_prefetch=0,
            grid=grid,
            in_specs=[
                pl.BlockSpec((2, R, F), lambda i: (0, i, 0)),        # merged el/et carrier
                pl.BlockSpec((F, FH), lambda i: (0, 0)),             # w1 (resident)
                pl.BlockSpec((1, FH), lambda i: (0, 0)),             # b1
                pl.BlockSpec((FH, FH), lambda i: (0, 0)),            # w2 block-diag (resident)
                pl.BlockSpec((1, FH), lambda i: (0, 0)),             # b2
                pl.BlockSpec((F * D_pad, FH), lambda i: (0, 0)),     # fused gather table
            ],
            out_specs=pl.BlockSpec((R, FH), lambda i: (i, 0)),       # lane-dense output
        ),
        compiler_params=pltpu.CompilerParams(
            dimension_semantics=("parallel",),                       # megacore / v7x 2-TC sharding
        ),
    )(carrier, w1_blk, b1_blk, w2_blk, b2_blk, emb_cat)

    # Free reshape back to edge-major (E, H) and drop the padded tail.
    return out_folded.reshape(E_pack, H)[:E]


def init_params(key, hidden_dim=32, dict_size=100):
    # Deterministic synthetic parameters (shapes match the PyTorch module's __init__).
    k1, k2, k3, k4, k5 = jax.random.split(key, 5)
    w1 = jax.random.normal(k1, (1, hidden_dim), jnp.float32) * 0.5
    b1 = jax.random.normal(k2, (1, hidden_dim), jnp.float32) * 0.1
    w2 = jax.random.normal(k3, (hidden_dim, hidden_dim), jnp.float32) * (1.0 / hidden_dim ** 0.5)
    b2 = jax.random.normal(k4, (1, hidden_dim), jnp.float32) * 0.1
    emb = jax.random.normal(k5, (dict_size, hidden_dim), jnp.float32)
    return {"w1": w1, "b1": b1, "w2": w2, "b2": b2, "emb": emb}


def reference(edge_length, edge_type, params):
    # Pure-JAX reference mirroring the PyTorch forward.
    h = edge_length @ params["w1"] + params["b1"]
    h = jnp.maximum(h, 0.0)
    d_emb = h @ params["w2"] + params["b2"]
    edge_attr = jnp.take(params["emb"], edge_type, axis=0)
    return d_emb * edge_attr


if __name__ == "__main__":
    key = jax.random.PRNGKey(0)
    kp, kl, kt = jax.random.split(key, 3)

    E, H, DICT = 2000, 32, 100      # ragged E (not a multiple of the tile) on purpose
    params = init_params(kp, hidden_dim=H, dict_size=DICT)
    prepared = prepare_params(params)   # one-time transform, hoisted out of the jitted forward

    edge_length = jax.random.uniform(kl, (E, 1), jnp.float32, 0.5, 3.0)
    edge_type = jax.random.randint(kt, (E,), 0, DICT, jnp.int32)

    # TODO(synk): like the one-hot gather, edge_type values >= dict_size silently yield a zero
    # embedding instead of raising like nn.Embedding would.
    out = mlp_edge_encoder(edge_length, edge_type, prepared)
    out = jax.block_until_ready(out)

    ref = reference(edge_length, edge_type, params)
    assert out.shape == (E, H)
    assert jnp.allclose(out, ref, atol=1e-4, rtol=1e-4), "mismatch vs reference"

    print("KERNEL_OK")
</pallas_src>

<mosaic_0001>
module attributes {stable_mosaic.version = 11 : i64} {
  func.func @_edge_encoder_kernel(%arg0: i32, %arg1: memref<2x128x4xi32, #tpu.memory_space<vmem>>, %arg2: memref<4x128xf32, #tpu.memory_space<vmem>>, %arg3: memref<1x128xf32, #tpu.memory_space<vmem>>, %arg4: memref<128x128xf32, #tpu.memory_space<vmem>>, %arg5: memref<1x128xf32, #tpu.memory_space<vmem>>, %arg6: memref<512x128xf32, #tpu.memory_space<vmem>>, %arg7: memref<128x128xf32, #tpu.memory_space<vmem>>) attributes {dimension_semantics = [#tpu.dimension_semantics<parallel>], iteration_bounds = array<i64: 4>, scalar_prefetch = 0 : i64, scratch_operands = 0 : i64, tpu.core_type = #tpu.core_type<tc>, window_params = [{transform_indices = @transform_0, window_bounds = array<i64: 2, 128, 4>}, {pipeline_mode = #tpu.pipeline_mode<synchronous>, transform_indices = @transform_1, window_bounds = array<i64: 4, 128>}, {pipeline_mode = #tpu.pipeline_mode<synchronous>, transform_indices = @transform_2, window_bounds = array<i64: 1, 128>}, {pipeline_mode = #tpu.pipeline_mode<synchronous>, transform_indices = @transform_3, window_bounds = array<i64: 128, 128>}, {pipeline_mode = #tpu.pipeline_mode<synchronous>, transform_indices = @transform_4, window_bounds = array<i64: 1, 128>}, {pipeline_mode = #tpu.pipeline_mode<synchronous>, transform_indices = @transform_5, window_bounds = array<i64: 512, 128>}, {transform_indices = @transform_6, window_bounds = array<i64: 128, 128>}]} {
    %c0 = arith.constant 0 : index
    %c0_0 = arith.constant 0 : index
    %c0_1 = arith.constant 0 : index
    %0 = vector.load %arg1[%c0, %c0_0, %c0_1] : memref<2x128x4xi32, #tpu.memory_space<vmem>>, vector<1x128x4xi32>
    %1 = vector.shape_cast %0 : vector<1x128x4xi32> to vector<128x4xi32>
    %2 = tpu.bitcast %1 : vector<128x4xi32> -> vector<128x4xf32>
    %c1 = arith.constant 1 : index
    %c0_2 = arith.constant 0 : index
    %c0_3 = arith.constant 0 : index
    %3 = vector.load %arg1[%c1, %c0_2, %c0_3] : memref<2x128x4xi32, #tpu.memory_space<vmem>>, vector<1x128x4xi32>
    %4 = vector.shape_cast %3 : vector<1x128x4xi32> to vector<128x4xi32>
    %c0_4 = arith.constant 0 : index
    %c0_5 = arith.constant 0 : index
    %5 = vector.load %arg2[%c0_4, %c0_5] : memref<4x128xf32, #tpu.memory_space<vmem>>, vector<4x128xf32>
    %cst = arith.constant dense<0.000000e+00> : vector<128x128xf32>
    %6 = tpu.matmul %2, %5, %cst {dimension_numbers = #tpu.dot_dimension_numbers<[1], [0], [0], [1], [0, 0, 1, 1], [], []>} : vector<128x4xf32>, vector<4x128xf32>, vector<128x128xf32> -> vector<128x128xf32>
    %c0_6 = arith.constant 0 : index
    %c0_7 = arith.constant 0 : index
    %7 = vector.load %arg3[%c0_6, %c0_7] : memref<1x128xf32, #tpu.memory_space<vmem>>, vector<1x128xf32>
    %8 = vector.broadcast %7 : vector<1x128xf32> to vector<128x128xf32>
    %9 = arith.addf %6, %8 : vector<128x128xf32>
    %cst_8 = arith.constant 0.000000e+00 : f32
    %10 = vector.broadcast %cst_8 : f32 to vector<128x128xf32>
    %11 = arith.maximumf %9, %10 : vector<128x128xf32>
    %c0_9 = arith.constant 0 : index
    %c0_10 = arith.constant 0 : index
    %12 = vector.load %arg4[%c0_9, %c0_10] : memref<128x128xf32, #tpu.memory_space<vmem>>, vector<128x128xf32>
    %cst_11 = arith.constant dense<0.000000e+00> : vector<128x128xf32>
    %13 = tpu.matmul %11, %12, %cst_11 {dimension_numbers = #tpu.dot_dimension_numbers<[1], [0], [0], [1], [0, 0, 1, 1], [], []>} : vector<128x128xf32>, vector<128x128xf32>, vector<128x128xf32> -> vector<128x128xf32>
    %c0_12 = arith.constant 0 : index
    %c0_13 = arith.constant 0 : index
    %14 = vector.load %arg5[%c0_12, %c0_13] : memref<1x128xf32, #tpu.memory_space<vmem>>, vector<1x128xf32>
    %15 = vector.broadcast %14 : vector<1x128xf32> to vector<128x128xf32>
    %16 = arith.addf %13, %15 : vector<128x128xf32>
    %17 = tpu.iota {dimensions = array<i32: 1>} : vector<128x128xi32>
    %18 = vector.extract_strided_slice %4 {offsets = [0, 0], sizes = [128, 1], strides = [1, 1]} : vector<128x4xi32> to vector<128x1xi32>
    %19 = vector.broadcast %18 : vector<128x1xi32> to vector<128x128xi32>
    %20 = arith.cmpi eq, %19, %17 : vector<128x128xi32>
    %21 = arith.extui %20 : vector<128x128xi1> to vector<128x128xi32>
    %22 = arith.sitofp %21 : vector<128x128xi32> to vector<128x128xf32>
    %23 = vector.extract_strided_slice %4 {offsets = [0, 1], sizes = [128, 1], strides = [1, 1]} : vector<128x4xi32> to vector<128x1xi32>
    %24 = vector.broadcast %23 : vector<128x1xi32> to vector<128x128xi32>
    %25 = arith.cmpi eq, %24, %17 : vector<128x128xi32>
    %26 = arith.extui %25 : vector<128x128xi1> to vector<128x128xi32>
    %27 = arith.sitofp %26 : vector<128x128xi32> to vector<128x128xf32>
    %28 = vector.extract_strided_slice %4 {offsets = [0, 2], sizes = [128, 1], strides = [1, 1]} : vector<128x4xi32> to vector<128x1xi32>
    %29 = vector.broadcast %28 : vector<128x1xi32> to vector<128x128xi32>
    %30 = arith.cmpi eq, %29, %17 : vector<128x128xi32>
    %31 = arith.extui %30 : vector<128x128xi1> to vector<128x128xi32>
    %32 = arith.sitofp %31 : vector<128x128xi32> to vector<128x128xf32>
    %33 = vector.extract_strided_slice %4 {offsets = [0, 3], sizes = [128, 1], strides = [1, 1]} : vector<128x4xi32> to vector<128x1xi32>
    %34 = vector.broadcast %33 : vector<128x1xi32> to vector<128x128xi32>
    %35 = arith.cmpi eq, %34, %17 : vector<128x128xi32>
    %36 = arith.extui %35 : vector<128x128xi1> to vector<128x128xi32>
    %37 = arith.sitofp %36 : vector<128x128xi32> to vector<128x128xf32>
    %38 = tpu.concatenate %22, %27, %32, %37 in 1 : vector<128x128xf32>, vector<128x128xf32>, vector<128x128xf32>, vector<128x128xf32> -> vector<128x512xf32>
    %c0_14 = arith.constant 0 : index
    %c0_15 = arith.constant 0 : index
    %39 = vector.load %arg6[%c0_14, %c0_15] : memref<512x128xf32, #tpu.memory_space<vmem>>, vector<512x128xf32>
    %cst_16 = arith.constant dense<0.000000e+00> : vector<128x128xf32>
    %40 = tpu.matmul %38, %39, %cst_16 {dimension_numbers = #tpu.dot_dimension_numbers<[1], [0], [0], [1], [0, 0, 1, 1], [], []>} : vector<128x512xf32>, vector<512x128xf32>, vector<128x128xf32> -> vector<128x128xf32>
    %41 = arith.mulf %16, %40 : vector<128x128xf32>
    %c0_17 = arith.constant 0 : index
    %c0_18 = arith.constant 0 : index
    %42 = vector.load %arg7[%c0_17, %c0_18] : memref<128x128xf32, #tpu.memory_space<vmem>>, vector<128x128xf32>
    tpu.vector_store %arg7[%c0_17, %c0_18], %41 {strides = array<i32>} : memref<128x128xf32, #tpu.memory_space<vmem>>, vector<128x128xf32>,
    return
  }
  func.func @transform_0(%arg0: i32) -> (i32, i32, i32) {
    %c0_i32 = arith.constant 0 : i32
    %c0_i32_0 = arith.constant 0 : i32
    %c0_i32_1 = arith.constant 0 : i32
    return %c0_i32, %arg0, %c0_i32_0 : i32, i32, i32
  }
  func.func @transform_1(%arg0: i32) -> (i32, i32) {
    %c0_i32 = arith.constant 0 : i32
    %c0_i32_0 = arith.constant 0 : i32
    %c0_i32_1 = arith.constant 0 : i32
    return %c0_i32, %c0_i32_0 : i32, i32
  }
  func.func @transform_2(%arg0: i32) -> (i32, i32) {
    %c0_i32 = arith.constant 0 : i32
    %c0_i32_0 = arith.constant 0 : i32
    %c0_i32_1 = arith.constant 0 : i32
    return %c0_i32, %c0_i32_0 : i32, i32
  }
  func.func @transform_3(%arg0: i32) -> (i32, i32) {
    %c0_i32 = arith.constant 0 : i32
    %c0_i32_0 = arith.constant 0 : i32
    %c0_i32_1 = arith.constant 0 : i32
    return %c0_i32, %c0_i32_0 : i32, i32
  }
  func.func @transform_4(%arg0: i32) -> (i32, i32) {
    %c0_i32 = arith.constant 0 : i32
    %c0_i32_0 = arith.constant 0 : i32
    %c0_i32_1 = arith.constant 0 : i32
    return %c0_i32, %c0_i32_0 : i32, i32
  }
  func.func @transform_5(%arg0: i32) -> (i32, i32) {
    %c0_i32 = arith.constant 0 : i32
    %c0_i32_0 = arith.constant 0 : i32
    %c0_i32_1 = arith.constant 0 : i32
    return %c0_i32, %c0_i32_0 : i32, i32
  }
  func.func @transform_6(%arg0: i32) -> (i32, i32) {
    %c0_i32 = arith.constant 0 : i32
    %c0_i32_0 = arith.constant 0 : i32
    return %arg0, %c0_i32 : i32, i32
  }
}

</mosaic_0001>

<bundles_post_ra>
// kernel: mlp_edge_encoder.1
= control target key start
LH: loop header
LB: loop body
LE: loop exit
PB: predicated region body
PF: predicated region fallthrough
CT: control target
= control target key end

     0   :  { %s2451_s21 = smov 0   ;;  %s2453_s22 = smov 0   ;;  %s3536_s0 = inlined_call_operand.vmem [shape: s32[2,504,4], index: 0, kind: input, shape index: {}]   ;;  %s3537_s1 = inlined_call_operand.vmem [shape: f32[4,128], index: 1, kind: input, shape index: {}]   ;;  %s3538_s2 = inlined_call_operand.vmem [shape: f32[1,128], index: 2, kind: input, shape index: {}]   ;;  %s3539_s3 = inlined_call_operand.vmem [shape: f32[128,128], index: 3, kind: input, shape index: {}]   ;;  %s3540_s4 = inlined_call_operand.vmem [shape: f32[1,128], index: 4, kind: input, shape index: {}]   ;;  %s3541_s5 = inlined_call_operand.vmem [shape: f32[512,128], index: 5, kind: input, shape index: {}]   ;;  %s3542_s6 = inlined_call_operand.vmem [shape: f32[504,128], index: 6, kind: output, shape index: {}]  }
   0x1   :  { %s2455_s23 = smov 0  }
   0x2 LB: > { %s2467_s24 = sadd.s32 4294967295, %s2345_s23   ;;  %s2470_s25 = sadd.s32 1, %s2345_s23   ;;  %s2345_s23 = sphi %s2455_s23, %s3556_s23   ;;  %s2341_s22 = sphi %s2453_s22, %s3555_s22   ;;  %s2337_s21 = sphi %s2451_s21, %s3554_s21  }
   0x3   : > { %s20_s26 = ssub.s32 %s2345_s23, %s2470_s25  ;;  %s23_s27 = sadd.s32 1, %s2341_s22 }
   0x4   : > { %p21_p0 = scmp.eq.s32.totalorder %s20_s26, 0  ;;  %p30_p1 = scmp.ne.s32.totalorder %s2341_s22, %s2337_s21 }
   0x5   : > { %p31_p2 = scmp.eq.s32.totalorder %s2345_s23, 0  ;;  %p165_p3 = scmp.eq.s32.totalorder %s2467_s24, 3 }
   0x6   : > { %s2480_s28 = scalar_select %p21_p0, %s2341_s22, %s23_s27  }
   0x7   : > { %p32_p4 = por %p31_p2, %p30_p1  ;;  %p2482_p5 = por %p165_p3, %p30_p1 }
   0x8   : > { %p1809_p6 = scmp.ge.s32.totalorder %s2345_s23, 4 }
   0xa   : > { %202 = sbr.rel (%p1809_p6) target bundleno = 84 (0x54), region = 36 }
   0xf   : > { %205 = sbr.rel (!%p32_p4) target bundleno = 84 (0x54), region = 40  ;;  %s207_s30 = sand.u32 (%p32_p4), 1, %s2341_s22  }
  0x10   : > { %s1811_s7 = sshll.u32 (%p32_p4), %s2345_s23, 4  ;;  %s1810_s8 = sshll.u32 (%p32_p4), %s207_s30, 8 }
  0x11   : > { %s211_s9 = ssub.s32 (%p32_p4), 63, %s1811_s7  ;;  %s2006_s10 = sshll.u32 (%p32_p4), %s2345_s23, 7 }
  0x12   : > { %p212_p7 = scmp.lt.s32.totalorder (%p32_p4), %s211_s9, 16  ;;  %s2495_s13 = scalar_lea.vmem (%p32_p4), %s3536_s0, %s2006_s10  }
  0x13   : > { %s2498_s15 = scalar_lea.vmem (%p32_p4), [#allocation2], %s1810_s8  }
  0x14   : > { %s3558_s9 = smov (!%p212_p7, %s211_s9), 16 }
  0x15   : > { %s1812_s14 = sshll.u32 %s3558_s9, 4 }
  0x16   : > { %p1815_p8 = scmp.eq.s32.totalorder %s1812_s14, 0 }
  0x17   : > { %s2501_s16 = sshrl.u32 (!%p1815_p8), %s3558_s9, 4 }
  0x18   : > { %220 = sbr.rel (%p1815_p8) target bundleno = 84 (0x54), region = 44  ;;  %p1816_p9 = scmp.le.s32.totalorder (!%p1815_p8), %s2501_s16, 0 }
  0x1d   : > { %1735 = sbr.rel (%p1816_p9) target bundleno = 67 (0x43), region = 194  ;;  %s3544_s17 = smov (!%p1816_p9), %s2498_s15 }
  0x1e   : > { %s3545_s18 = smov (!%p1816_p9), %s2495_s13  ;;  %s2510_s19 = smov (!%p1816_p9), 0  }
  0x1f   : > { %s2512_s20 = smov (!%p1816_p9), 0  }
  0x22 LB: >> { %v347_v0 = vld [vmem:[%s2353_s18] sm:$0xff]  ;;  %v349_v1 = vld [vmem:[%s2353_s18 + $0x8] sm:$0xff]  ;;  %v351_v2 = vld [vmem:[%s2353_s18 + $0x10] sm:$0xff]  ;;  %s411_s26 = sadd.s32 1, %s2357_s19  ;;  %s341_s20 = sadd.s32 1, %s2361_s20   ;;  %s2361_s20 = sphi %s2512_s20, %s341_s20   ;;  %s2357_s19 = sphi %s2510_s19, %s3548_s19   ;;  %s2353_s18 = sphi %s3545_s18, %s3547_s18   ;;  %s2349_s17 = sphi %s3544_s17, %s3546_s17  }
  0x23   : >> { %348 = vst [vmem:[%s2349_s17] sm:$0xff] %v347_v0  ;;  %v353_v3 = vld [vmem:[%s2353_s18 + $0x18] sm:$0xff]  ;;  %p412_p10 = scmp.ge.s32.totalorder %s411_s26, %s2501_s16  ;;  %v355_v4 = vld [vmem:[%s2353_s18 + $0x20] sm:$0xff]  ;;  %v357_v5 = vld [vmem:[%s2353_s18 + $0x28] sm:$0xff]  ;;  %p340_p11 = scmp.ge.s32.totalorder %s341_s20, %s2501_s16 }
  0x24   : >> { %350 = vst [vmem:[%s2349_s17 + $0x8] sm:$0xff] %v349_v1  ;;  %v359_v6 = vld [vmem:[%s2353_s18 + $0x30] sm:$0xff]  ;;  %v361_v7 = vld [vmem:[%s2353_s18 + $0x38] sm:$0xff]  ;;  %v363_v8 = vld [vmem:[%s2353_s18 + $0x40] sm:$0xff] }
  0x25   : >> { %352 = vst [vmem:[%s2349_s17 + $0x10] sm:$0xff] %v351_v2  ;;  %s3560_s26 = smov (%p412_p10, %s411_s26), 0  ;;  %v365_v9 = vld [vmem:[%s2353_s18 + $0x48] sm:$0xff]  ;;  %v367_v10 = vld [vmem:[%s2353_s18 + $0x50] sm:$0xff]  ;;  %v369_v11 = vld [vmem:[%s2353_s18 + $0x58] sm:$0xff] }
  0x26   : >> { %354 = vst [vmem:[%s2349_s17 + $0x18] sm:$0xff] %v353_v3  ;;  %s1817_s27 = sshll.u32 %s3560_s26, 7  ;;  %v371_v12 = vld [vmem:[%s2353_s18 + $0x60] sm:$0xff]  ;;  %v373_v13 = vld [vmem:[%s2353_s18 + $0x68] sm:$0xff]  ;;  %v375_v14 = vld [vmem:[%s2353_s18 + $0x70] sm:$0xff]  ;;  %s3548_s19 = smov %s3560_s26 }
  0x27   : >> { %356 = vst [vmem:[%s2349_s17 + $0x20] sm:$0xff] %v355_v4  ;;  %s2544_s30 = scalar_lea.vmem %s2495_s13, %s1817_s27   ;;  %s2547_s7 = scalar_lea.vmem %s2498_s15, %s1817_s27 [#allocation2]   ;;  %v377_v15 = vld [vmem:[%s2353_s18 + $0x78] sm:$0xff]  ;;  %v381_v17 = vld [vmem:[%s2353_s18 + $0x200] sm:$0xff]  ;;  %v383_v18 = vld [vmem:[%s2353_s18 + $0x208] sm:$0xff] }
  0x28   : >> { %358 = vst [vmem:[%s2349_s17 + $0x28] sm:$0xff] %v357_v5  ;;  %v379_v16 = vld [vmem:[%s2353_s18 + $0x1f8] sm:$0xff]  ;;  %v385_v19 = vld [vmem:[%s2353_s18 + $0x210] sm:$0xff]  ;;  %v389_v21 = vld [vmem:[%s2353_s18 + $0x220] sm:$0xff] }
  0x29   : >> { %360 = vst [vmem:[%s2349_s17 + $0x30] sm:$0xff] %v359_v6  ;;  %v387_v20 = vld [vmem:[%s2353_s18 + $0x218] sm:$0xff]  ;;  %v391_v22 = vld [vmem:[%s2353_s18 + $0x228] sm:$0xff]  ;;  %v393_v23 = vld [vmem:[%s2353_s18 + $0x230] sm:$0xff] }
  0x2a   : >> { %362 = vst [vmem:[%s2349_s17 + $0x38] sm:$0xff] %v361_v7  ;;  %v395_v24 = vld [vmem:[%s2353_s18 + $0x238] sm:$0xff]  ;;  %v397_v25 = vld [vmem:[%s2353_s18 + $0x240] sm:$0xff]  ;;  %v399_v26 = vld [vmem:[%s2353_s18 + $0x248] sm:$0xff] }
  0x2b   : >> { %364 = vst [vmem:[%s2349_s17 + $0x40] sm:$0xff] %v363_v8  ;;  %v401_v27 = vld [vmem:[%s2353_s18 + $0x250] sm:$0xff]  ;;  %v403_v28 = vld [vmem:[%s2353_s18 + $0x258] sm:$0xff]  ;;  %v405_v29 = vld [vmem:[%s2353_s18 + $0x260] sm:$0xff] }
  0x2c   : >> { %366 = vst [vmem:[%s2349_s17 + $0x48] sm:$0xff] %v365_v9  ;;  %v407_v30 = vld [vmem:[%s2353_s18 + $0x268] sm:$0xff]  ;;  %v409_v31 = vld [vmem:[%s2353_s18 + $0x270] sm:$0xff]  ;;  %s3547_s18 = smov %s2544_s30 }
  0x2d   : >> { %368 = vst [vmem:[%s2349_s17 + $0x50] sm:$0xff] %v367_v10 }
  0x2e   : >> { %370 = vst [vmem:[%s2349_s17 + $0x58] sm:$0xff] %v369_v11 }
  0x2f   : >> { %372 = vst [vmem:[%s2349_s17 + $0x60] sm:$0xff] %v371_v12 }
  0x30   : >> { %374 = vst [vmem:[%s2349_s17 + $0x68] sm:$0xff] %v373_v13 }
  0x31   : >> { %376 = vst [vmem:[%s2349_s17 + $0x70] sm:$0xff] %v375_v14 }
  0x32   : >> { %378 = vst [vmem:[%s2349_s17 + $0x78] sm:$0xff] %v377_v15 }
  0x33   : >> { %380 = vst [vmem:[%s2349_s17 + $0x80] sm:$0xff] %v379_v16 }
  0x34   : >> { %382 = vst [vmem:[%s2349_s17 + $0x88] sm:$0xff] %v381_v17 }
  0x35   : >> { %384 = vst [vmem:[%s2349_s17 + $0x90] sm:$0xff] %v383_v18 }
  0x36   : >> { %386 = vst [vmem:[%s2349_s17 + $0x98] sm:$0xff] %v385_v19 }
  0x37   : >> { %388 = vst [vmem:[%s2349_s17 + $0xa0] sm:$0xff] %v387_v20 }
  0x38   : >> { %390 = vst [vmem:[%s2349_s17 + $0xa8] sm:$0xff] %v389_v21 }
  0x39   : >> { %392 = vst [vmem:[%s2349_s17 + $0xb0] sm:$0xff] %v391_v22 }
  0x3a   : >> { %394 = vst [vmem:[%s2349_s17 + $0xb8] sm:$0xff] %v393_v23 }
  0x3b   : >> { %396 = vst [vmem:[%s2349_s17 + $0xc0] sm:$0xff] %v395_v24 }
  0x3c   : >> { %398 = vst [vmem:[%s2349_s17 + $0xc8] sm:$0xff] %v397_v25 }
  0x3d   : >> { %400 = vst [vmem:[%s2349_s17 + $0xd0] sm:$0xff] %v399_v26 }
  0x3e   : >> { %402 = vst [vmem:[%s2349_s17 + $0xd8] sm:$0xff] %v401_v27  ;;  %343 = sbr.rel (!%p340_p11) target bundleno = 34 (0x22), region = 200 }
  0x3f   : >> { %404 = vst [vmem:[%s2349_s17 + $0xe0] sm:$0xff] %v403_v28 }
  0x40   : >> { %406 = vst [vmem:[%s2349_s17 + $0xe8] sm:$0xff] %v405_v29 }
  0x41   : >> { %408 = vst [vmem:[%s2349_s17 + $0xf0] sm:$0xff] %v407_v30 }
  0x42   : >> { %410 = vst [vmem:[%s2349_s17 + $0xf8] sm:$0xff] %v409_v31  ;;  %s3546_s17 = smov %s2547_s7 }
  0x43 PF: > { %s2612_s8 = sand.u32 15, %s3558_s9   ;;  %s2007_s10 = sshll.u32 %s2501_s16, 7 }
  0x44   : > { %s2616_s11 = scalar_lea.vmem %s2495_s13, %s2007_s10   ;;  %s424_s12 = scalar_lea.vmem %s2498_s15, %s2007_s10 [#allocation2]  }
  0x45   : > { %p1822_p12 = scmp.le.s32.totalorder %s2612_s8, 0 }
  0x46   : > { %s2363_s14 = smov (!%p1822_p12), %s424_s12   ;;  %s2367_s26 = smov (!%p1822_p12), %s2616_s11  }
  0x47   : > { %1749 = sbr.rel (%p1822_p12) target bundleno = 84 (0x54), region = 205  ;;  %s2371_s27 = smov (!%p1822_p12), 0  }
  0x48   : > { %s2375_s20 = smov (!%p1822_p12), 0  }
  0x4c LB: >> { %v434_v32 = vld [vmem:[%s2369_s26] sm:$0xff]  ;;  %v436_v33 = vld [vmem:[%s2369_s26 + $0x1f8] sm:$0xff]  ;;  %s438_s9 = sadd.s32 1, %s2373_s27  ;;  %s428_s20 = sadd.s32 1, %s2377_s20   ;;  %s2377_s20 = sphi %s2375_s20, %s428_s20   ;;  %s2373_s27 = sphi %s2371_s27, %s2372_s27   ;;  %s2369_s26 = sphi %s2367_s26, %s443_s26   ;;  %s2365_s14 = sphi %s2363_s14, %s444_s14  }
  0x4d   : >> { %435 = vst [vmem:[%s2365_s14] sm:$0xff] %v434_v32  ;;  %p439_p13 = scmp.ge.s32.totalorder %s438_s9, %s2612_s8  ;;  %p427_p0 = scmp.ge.s32.totalorder %s428_s20, %s2612_s8 }
  0x4e   : >> { %437 = vst [vmem:[%s2365_s14 + $0x80] sm:$0xff] %v436_v33 }
  0x4f   : >> { %s3562_s9 = smov (%p439_p13, %s438_s9), 0  ;;  %430 = sbr.rel (!%p427_p0) target bundleno = 76 (0x4c), region = 211 }
  0x50   : >> { %s1823_s13 = sshll.u32 %s3562_s9, 3  ;;  %s2372_s27 = smov %s3562_s9  }
  0x51   : >> { %s443_s26 = scalar_lea.vmem %s2616_s11, %s1823_s13   ;;  %s444_s14 = scalar_lea.vmem %s424_s12, %s1823_s13 [#allocation2]  }
  0x54 PF: > { %p1825_p1 = scmp.ge.s32.totalorder %s2345_s23, 1  ;;  %p449_p2 = scmp.lt.s32.totalorder %s2345_s23, 5 }
  0x56   : > { %p450_p3 = pnand %p1825_p1, %p449_p2 }
  0x57   : > { %s456_s17 = sand.u32 (!%p450_p3), 1, %s2337_s21  }
  0x58   : > { %453 = sbr.rel (%p450_p3) target bundleno = 628 (0x274), region = 92  ;;  %s1826_s18 = sshll.u32 (!%p450_p3), %s456_s17, 8 }
  0x59   : > { %s2633_s23 = scalar_lea.vmem (!%p450_p3), [#allocation2], %s1826_s18  ;;  %s1827_s8 = sshll.u32 (!%p450_p3), %s456_s17, 7 }
  0x5a   : > { %s3384_s10 = scalar_lea.vmem (!%p450_p3), [#allocation3], %s1827_s8  }
  0x5d   : > { %v527_v34 = vld [vmem:[%s3537_s1] sm:$0xf]  ;;  %vm565_vm0 = vcmask 1043456   ;;  %vm532_vm1 = vcmask 31744   ;;  %v2411_v35 = vmov 0   ;;  %v504_v37 = vld [vmem:[%s2633_s23 + $0x50] sm:$0xff] }
  0x5e   : > { %1844 = vmatpush.msk.msra.mxu0 %vm565_vm0, %v527_v34  ;;  %2012 = vmatpush.msk.msra.mxu2 %vm565_vm0, %v527_v34  ;;  %v494_v36 = vld [vmem:[%s2633_s23] sm:$0xff]  ;;  %v2638_v38 = vld [vmem:[%s2633_s23 + $0x90] sm:$0xff]  ;;  %v495_v42 = vld [vmem:[%s2633_s23 + $0x8] sm:$0xff]  ;;  %v2412_v62 = vmov 1   ;;  %v2413_v5 = vmov 2   ;;  %v2414_v11 = vmov 3  }
  0x5f   : > { %2220 = vset.pattern.permute.xlu1 %v2411_v35  ;;  %2013 = vmatpush.msk.msra.mxu3 %vm565_vm0, %v527_v34  ;;  %v506_v39 = vld [vmem:[%s2633_s23 + $0x60] sm:$0xff]  ;;  %v505_v43 = vld [vmem:[%s2633_s23 + $0x58] sm:$0xff]  ;;  %v507_v45 = vld [vmem:[%s2633_s23 + $0x68] sm:$0xff]  ;;  %s1990_s21 = sshll.u32 (%p2482_p5), %s2467_s24, 4  ;;  %s2009_s17 = sshll.u32 (%p2482_p5), %s2467_s24, 7 }
  0x60   : > { %2219 = vset.pattern.permute.xlu0 %v2411_v35  ;;  %2221 = vset.pattern.permute.xlu2 %v2411_v35  ;;  %v2648_v40 = vld [vmem:[%s2633_s23 + $0x80] sm:$0xff]  ;;  %v2658_v44 = vld [vmem:[%s2633_s23 + $0x98] sm:$0xff]  ;;  %v2665_v46 = vld [vmem:[%s2633_s23 + $0x88] sm:$0xff]  ;;  %s1485_s11 = ssub.s32 (%p2482_p5), 63, %s1990_s21  ;;  %s3439_s26 = scalar_lea.vmem (%p2482_p5), %s3542_s6, %s2009_s17  }
  0x61   : > { %1845 = vmatmul.msk.f32.vlgmr.msra.gmra.mxu0 %vm532_vm1, %v494_v36  ;;  %1855 = vmatmul.msk.f32.vlgmr.msra.gmra.mxu2 %vm532_vm1, %v504_v37  ;;  %v2652_v41 = vld [vmem:[%s2633_s23 + $0xa0] sm:$0xff]  ;;  %v2669_v47 = vld [vmem:[%s2633_s23 + $0xa8] sm:$0xff]  ;;  %v496_v48 = vld [vmem:[%s2633_s23 + $0x10] sm:$0xff]  ;;  %p1486_p4 = scmp.lt.s32.totalorder (%p2482_p5), %s1485_s11, 16 }
  0x62   : > { %744 = vperm.xlu1 %2220, %v2638_v38   ;;  %1857 = vmatmul.msk.f32.vlgmr.msra.gmra.mxu3 %vm532_vm1, %v506_v39  ;;  %v2675_v49 = vld [vmem:[%s2633_s23 + $0xb8] sm:$0xff]  ;;  %v508_v50 = vld [vmem:[%s2633_s23 + $0x70] sm:$0xff]  ;;  %v2685_v52 = vld [vmem:[%s2633_s23 + $0xc0] sm:$0xff] }
  0x63   : > { %738 = vperm.xlu0 %2219, %v2648_v40   ;;  %750 = vperm.xlu2 %2221, %v2652_v41   ;;  %v2681_v51 = vld [vmem:[%s2633_s23 + $0xb0] sm:$0xff]  ;;  %v497_v53 = vld [vmem:[%s2633_s23 + $0x18] sm:$0xff]  ;;  %v2697_v56 = vld [vmem:[%s2633_s23 + $0xc8] sm:$0xff] }
  0x64   : > { %v2691_v54 = vld [vmem:[%s2633_s23 + $0xd0] sm:$0xff]  ;;  %v509_v55 = vld [vmem:[%s2633_s23 + $0x78] sm:$0xff]  ;;  %v498_v58 = vld [vmem:[%s2633_s23 + $0x20] sm:$0xff] }
  0x65   : > { %v2701_v57 = vld [vmem:[%s2633_s23 + $0xd8] sm:$0xff]  ;;  %v2707_v59 = vld [vmem:[%s2633_s23 + $0xe8] sm:$0xff]  ;;  %v2712_v60 = vld [vmem:[%s2633_s23 + $0xe0] sm:$0xff] }
  0x66   : > { %v499_v61 = vld [vmem:[%s2633_s23 + $0x28] sm:$0xff]  ;;  %v665_v63 = vld [vmem:[%s3539_s3 + $0x78] sm:$0xff]  ;;  %v664_v0 = vld [vmem:[%s3539_s3 + $0x70] sm:$0xff] }
  0x67   : > { %v2727_v1 = vld [vmem:[%s2633_s23 + $0xf0] sm:$0xff]  ;;  %670 = vmatpush.msra.mxu1 %v665_v63  ;;  %2015 = vmatpush.msrb.mxu3 %v665_v63  ;;  %v663_v3 = vld [vmem:[%s3539_s3 + $0x68] sm:$0xff]  ;;  %v662_v4 = vld [vmem:[%s3539_s3 + $0x60] sm:$0xff] }
  0x68   : > { %2014 = vmatpush.msrb.mxu2 %v665_v63  ;;  %v500_v2 = vld [vmem:[%s2633_s23 + $0x30] sm:$0xff]  ;;  %v661_v6 = vld [vmem:[%s3539_s3 + $0x58] sm:$0xff]  ;;  %v659_v9 = vld [vmem:[%s3539_s3 + $0x48] sm:$0xff] }
  0x69   : > { %1846 = vmatmul.msk.f32.gmra.mxu0 %vm532_vm1, %v495_v42  ;;  %1856 = vmatmul.msk.f32.gmra.mxu2 %vm532_vm1, %v505_v43  ;;  %v660_v7 = vld [vmem:[%s3539_s3 + $0x50] sm:$0xff]  ;;  %v501_v8 = vld [vmem:[%s2633_s23 + $0x38] sm:$0xff]  ;;  %v658_v10 = vld [vmem:[%s3539_s3 + $0x40] sm:$0xff] }
  0x6a   : > { %747 = vperm.xlu1 %2220, %v2658_v44   ;;  %1858 = vmatmul.msk.f32.gmra.mxu3 %vm532_vm1, %v507_v45  ;;  %v657_v12 = vld [vmem:[%s3539_s3 + $0x38] sm:$0xff]  ;;  %v502_v13 = vld [vmem:[%s2633_s23 + $0x40] sm:$0xff]  ;;  %v503_v14 = vld [vmem:[%s2633_s23 + $0x48] sm:$0xff] }
  0x6b   : > { %741 = vperm.xlu0 %2219, %v2665_v46   ;;  %753 = vperm.xlu2 %2221, %v2669_v47   ;;  %v656_v15 = vld [vmem:[%s3539_s3 + $0x30] sm:$0xff]  ;;  %v655_v16 = vld [vmem:[%s3539_s3 + $0x28] sm:$0xff]  ;;  %v654_v17 = vld [vmem:[%s3539_s3 + $0x20] sm:$0xff] }
  0x6c   : > { %671 = vmatpush.msra.mxu1 %v664_v0  ;;  %2017 = vmatpush.msrb.mxu3 %v664_v0  ;;  %v653_v18 = vld [vmem:[%s3539_s3 + $0x18] sm:$0xff]  ;;  %v652_v19 = vld [vmem:[%s3539_s3 + $0x10] sm:$0xff]  ;;  %v651_v20 = vld [vmem:[%s3539_s3 + $0x8] sm:$0xff] }
  0x6d   : > { %2016 = vmatpush.msrb.mxu2 %v664_v0  ;;  %v650_v21 = vld [vmem:[%s3539_s3] sm:$0xff]  ;;  %v1168_v26 = vld [vmem:[%s3541_s5 + $0x178] sm:$0xff]  ;;  %v1167_v29 = vld [vmem:[%s3541_s5 + $0x170] sm:$0xff] }
  0x6e   : > { %672 = vmatpush.msra.mxu1 %v663_v3  ;;  %2019 = vmatpush.msrb.mxu3 %v663_v3  ;;  %v1152_v27 = vld [vmem:[%s3541_s5 + $0xf8] sm:$0xff]  ;;  %v2843_v28 = vld [vmem:[%s3538_s2] ss:$0 sm:$0xff]  ;;  %v1151_v30 = vld [vmem:[%s3541_s5 + $0xf0] sm:$0xff] }
  0x6f   : > { %2018 = vmatpush.msrb.mxu2 %v663_v3  ;;  %1315 = vmatpush.msrb.mxu0 %v1168_v26  ;;  %v1150_v32 = vld [vmem:[%s3541_s5 + $0xe8] sm:$0xff]  ;;  %v1149_v36 = vld [vmem:[%s3541_s5 + $0xe0] sm:$0xff]  ;;  %v1147_v42 = vld [vmem:[%s3541_s5 + $0xd0] sm:$0xff] }
  0x70   : > { %673 = vmatpush.msra.mxu1 %v662_v4  ;;  %2021 = vmatpush.msrb.mxu3 %v662_v4  ;;  %v1165_v43 = vld [vmem:[%s3541_s5 + $0x160] sm:$0xff] }
  0x71   : > { %1847 = vmatmul.msk.f32.gmra.mxu0 %vm532_vm1, %v496_v48  ;;  %2020 = vmatpush.msrb.mxu2 %v662_v4  ;;  %v1164_v48 = vld [vmem:[%s3541_s5 + $0x158] sm:$0xff]  ;;  %v1161_v3 = vld [vmem:[%s3541_s5 + $0x140] sm:$0xff] }
  0x72   : > { %759 = vperm.xlu1 %2220, %v2675_v49   ;;  %1859 = vmatmul.msk.f32.gmra.mxu3 %vm532_vm1, %v508_v50  ;;  %v2959_v26 = vld [vmem:[%s3541_s5 + $0x1e0] sm:$0xff] }
  0x73   : > { %756 = vperm.xlu0 %2219, %v2681_v51   ;;  %762 = vperm.xlu2 %2221, %v2685_v52  }
  0x74   : > { %674 = vmatpush.msra.mxu1 %v661_v6  ;;  %2023 = vmatpush.msrb.mxu3 %v661_v6 }
  0x75   : > { %2022 = vmatpush.msrb.mxu2 %v661_v6  ;;  %1316 = vmatpush.msrb.mxu0 %v1167_v29  ;;  %v2968_v29 = vld [vmem:[%s3541_s5 + $0x1d8] sm:$0xff] }
  0x76   : > { %675 = vmatpush.msra.mxu1 %v660_v7  ;;  %2025 = vmatpush.msrb.mxu3 %v660_v7 }
  0x77   : > { %2024 = vmatpush.msrb.mxu2 %v660_v7 }
  0x78   : > { %676 = vmatpush.msra.mxu1 %v659_v9  ;;  %2027 = vmatpush.msrb.mxu3 %v659_v9 }
  0x79   : > { %1848 = vmatmul.msk.f32.gmra.mxu0 %vm532_vm1, %v497_v53  ;;  %2026 = vmatpush.msrb.mxu2 %v659_v9  ;;  %v1163_v53 = vld [vmem:[%s3541_s5 + $0x150] sm:$0xff] }
  0x7a   : > { %768 = vperm.xlu1 %2220, %v2691_v54   ;;  %1860 = vmatmul.msk.f32.gmra.mxu3 %vm532_vm1, %v509_v55  ;;  %v2931_v9 = vld [vmem:[%s3541_s5 + $0x1f0] sm:$0xff] }
  0x7b   : > { %765 = vperm.xlu0 %2219, %v2697_v56   ;;  %771 = vperm.xlu2 %2221, %v2701_v57  }
  0x7c   : > { %677 = vmatpush.msra.mxu1 %v658_v10  ;;  %2029 = vmatpush.msrb.mxu3 %v658_v10 }
  0x7d   : > { %2028 = vmatpush.msrb.mxu2 %v658_v10 }
  0x7e   : > { %678 = vmatpush.msra.mxu1 %v657_v12  ;;  %2031 = vmatpush.msrb.mxu3 %v657_v12 }
  0x7f   : > { %2030 = vmatpush.msrb.mxu2 %v657_v12  ;;  %v1160_v12 = vld [vmem:[%s3541_s5 + $0x138] sm:$0xff] }
  0x80   : > { %679 = vmatpush.msra.mxu1 %v656_v15  ;;  %2033 = vmatpush.msrb.mxu3 %v656_v15 }
  0x81   : > { %1849 = vmatmul.msk.f32.gmra.mxu0 %vm532_vm1, %v498_v58  ;;  %2032 = vmatpush.msrb.mxu2 %v656_v15  ;;  %v1144_v58 = vld [vmem:[%s3541_s5 + $0xb8] sm:$0xff]  ;;  %v1141_v15 = vld [vmem:[%s3541_s5 + $0xa0] sm:$0xff] }
  0x82   : > { %777 = vperm.xlu1 %2220, %v2707_v59   ;;  %680 = vmatpush.msra.mxu1 %v655_v16 }
  0x83   : > { %774 = vperm.xlu0 %2219, %v2712_v60   ;;  %2222 = vset.pattern.permute.xlu2 %v2412_v62 }
  0x84   : > { %834 = vperm.xlu2 %2222, %v2648_v40   ;;  %2035 = vmatpush.msrb.mxu3 %v655_v16 }
  0x85   : > { %681 = vmatpush.msra.mxu1 %v654_v17  ;;  %2034 = vmatpush.msrb.mxu2 %v655_v16  ;;  %v2944_v16 = vld [vmem:[%s3541_s5 + $0x1e8] sm:$0xff] }
  0x86   : > { %2037 = vmatpush.msrb.mxu3 %v654_v17 }
  0x87   : > { %682 = vmatpush.msra.mxu1 %v653_v18  ;;  %2036 = vmatpush.msrb.mxu2 %v654_v17  ;;  %v1159_v17 = vld [vmem:[%s3541_s5 + $0x130] sm:$0xff] }
  0x88   : > { %2039 = vmatpush.msrb.mxu3 %v653_v18 }
  0x89   : > { %1850 = vmatmul.msk.f32.gmra.mxu0 %vm532_vm1, %v499_v61  ;;  %683 = vmatpush.msra.mxu1 %v652_v19  ;;  %v1162_v61 = vld [vmem:[%s3541_s5 + $0x148] sm:$0xff] }
  0x8a   : > { %2223 = vset.pattern.permute.xlu1 %v2412_v62  ;;  %2041 = vmatpush.msrb.mxu3 %v652_v19 }
  0x8b   : > { %837 = vperm.xlu1 %2223, %v2665_v46   ;;  %780 = vperm.xlu0 %2219, %v2727_v1  }
  0x8c   : > { %2224 = vset.pattern.permute.xlu2 %v2413_v5  ;;  %684 = vmatpush.msra.mxu1 %v651_v20 }
  0x8d   : > { %930 = vperm.xlu2 %2224, %v2648_v40   ;;  %2043 = vmatpush.msrb.mxu3 %v651_v20 }
  0x8e   : > { %685 = vmatpush.msra.mxu1 %v650_v21  ;;  %2038 = vmatpush.msrb.mxu2 %v653_v18 }
  0x8f   : > { %2045 = vmatpush.msrb.mxu3 %v650_v21 }
  0x90   : > { %2040 = vmatpush.msrb.mxu2 %v652_v19 }
  0x91   : > { %1851 = vmatmul.msk.f32.gmra.mxu0 %vm532_vm1, %v500_v2  ;;  %1250 = vmatpush.msra.mxu3 %v1152_v27  ;;  %v1143_v2 = vld [vmem:[%s3541_s5 + $0xb0] sm:$0xff]  ;;  %v1158_v27 = vld [vmem:[%s3541_s5 + $0x128] sm:$0xff] }
  0x92   : > { %2042 = vmatpush.msrb.mxu2 %v651_v20 }
  0x93   : > { %2226 = vset.pattern.permute.xlu1 %v2413_v5  ;;  %2225 = vset.pattern.permute.xlu0 %v2412_v62 }
  0x94   : > { %933 = vperm.xlu1 %2226, %v2665_v46   ;;  %840 = vperm.xlu0 %2225, %v2638_v38  }
  0x95   : > { %2227 = vset.pattern.permute.xlu2 %v2414_v11  ;;  %2044 = vmatpush.msrb.mxu2 %v650_v21  ;;  %v1140_v21 = vld [vmem:[%s3541_s5 + $0x98] sm:$0xff] }
  0x96   : > { %1026 = vperm.xlu2 %2227, %v2648_v40   ;;  %1251 = vmatpush.msra.mxu3 %v1151_v30  ;;  %v1166_v40 = vld [vmem:[%s3541_s5 + $0x168] sm:$0xff] }
  0x97   : > { %1317 = vmatpush.msrb.mxu0 %v1166_v40  ;;  %v1138_v40 = vld [vmem:[%s3541_s5 + $0x88] sm:$0xff] }
  0x98   : > { %1252 = vmatpush.msra.mxu3 %v1150_v32  ;;  %v1139_v32 = vld [vmem:[%s3541_s5 + $0x90] sm:$0xff] }
  0x99   : > { %1852 = vmatmul.msk.f32.gmra.mxu0 %vm532_vm1, %v501_v8  ;;  %v1142_v8 = vld [vmem:[%s3541_s5 + $0xa8] sm:$0xff] }
  0x9a   : > { %1253 = vmatpush.msra.mxu3 %v1149_v36  ;;  %1318 = vmatpush.msrb.mxu0 %v1165_v43  ;;  %v1156_v43 = vld [vmem:[%s3541_s5 + $0x118] sm:$0xff] }
  0x9c   : > { %2228 = vset.pattern.permute.xlu1 %v2412_v62  ;;  %2230 = vset.pattern.permute.xlu0 %v2414_v11 }
  0x9d   : > { %843 = vperm.xlu1 %2228, %v2658_v44   ;;  %1029 = vperm.xlu0 %2230, %v2665_v46   ;;  %v1146_v46 = vld [vmem:[%s3541_s5 + $0xc8] sm:$0xff] }
  0x9e   : > { %2229 = vset.pattern.permute.xlu2 %v2413_v5  ;;  %1319 = vmatpush.msrb.mxu0 %v1164_v48  ;;  %v735_v48 = vlaneseq }
  0x9f   : > { %936 = vperm.xlu2 %2229, %v2638_v38  }
  0xa0   : > { %1320 = vmatpush.msrb.mxu0 %v1163_v53  ;;  %v1155_v53 = vld [vmem:[%s3541_s5 + $0x110] sm:$0xff] }
  0xa1   : > { %1853 = vmatmul.msk.f32.gmra.mxu0 %vm532_vm1, %v502_v13 }
  0xa2   : > { %1321 = vmatpush.msrb.mxu0 %v1162_v61  ;;  %v1154_v61 = vld [vmem:[%s3541_s5 + $0x108] sm:$0xff] }
  0xa4   : > { %1322 = vmatpush.msrb.mxu0 %v1161_v3  ;;  %v3027_v3 = vld [vmem:[%s3541_s5 + $0x1b8] sm:$0xff] }
  0xa5   : > { %846 = vperm.xlu1 %2228, %v2652_v41   ;;  %2233 = vset.pattern.permute.xlu0 %v2413_v5 }
  0xa6   : > { %942 = vperm.xlu0 %2233, %v2652_v41   ;;  %1323 = vmatpush.msrb.mxu0 %v1160_v12  ;;  %v3043_v12 = vld [vmem:[%s3541_s5 + $0x1b0] sm:$0xff] }
  0xa7   : > { %939 = vperm.xlu2 %2229, %v2658_v44  }
  0xa8   : > { %1324 = vmatpush.msrb.mxu0 %v1159_v17  ;;  %v1134_v17 = vld [vmem:[%s3541_s5 + $0x68] sm:$0xff] }
  0xa9   : > { %1854 = vmatmul.msk.f32.gmra.mxu0 %vm532_vm1, %v503_v14 }
  0xaa   : > { %1325 = vmatpush.msrb.mxu0 %v1158_v27  ;;  %v1133_v27 = vld [vmem:[%s3541_s5 + $0x60] sm:$0xff] }
  0xad   : > { %2231 = vset.pattern.permute.xlu1 %v2414_v11 }
  0xae   : > { %1032 = vperm.xlu1 %2231, %v2638_v38   ;;  %2236 = vset.pattern.permute.xlu0 %v2412_v62 }
  0xaf   : > { %855 = vperm.xlu0 %2236, %v2675_v49   ;;  %2232 = vset.pattern.permute.xlu2 %v2412_v62 }
  0xb0   : > { %849 = vperm.xlu2 %2232, %v2669_v47  }
  0xb6   : > { %1035 = vperm.xlu1 %2231, %v2658_v44  }
  0xb7   : > { %2239 = vset.pattern.permute.xlu0 %v2414_v11 }
  0xb8   : > { %1044 = vperm.xlu0 %2239, %v2681_v51   ;;  %852 = vperm.xlu2 %2232, %v2681_v51  }
  0xbd   : > { %v2818_v22 = vpop.permute.xlu2 %750 }
  0xbe   : > { %2234 = vset.pattern.permute.xlu1 %v2413_v5 }
  0xbf   : > { %945 = vperm.xlu1 %2234, %v2669_v47  }
  0xc0   : > { %2242 = vset.pattern.permute.xlu0 %v2413_v5  ;;  %2235 = vset.pattern.permute.xlu2 %v2414_v11 }
  0xc1   : > { %1038 = vperm.xlu2 %2235, %v2652_v41   ;;  %957 = vperm.xlu0 %2242, %v2697_v56   ;;  %v1148_v41 = vld [vmem:[%s3541_s5 + $0xd8] sm:$0xff] }
  0xc2   : > { %1254 = vmatpush.msra.mxu3 %v1148_v41  ;;  %v2989_v41 = vld [vmem:[%s3541_s5 + $0x1d0] sm:$0xff] }
  0xc4   : > { %1255 = vmatpush.msra.mxu3 %v1147_v42 }
  0xc5   : > { %v2829_v24 = vpop.permute.xlu2 %753 }
  0xc6   : > { %1256 = vmatpush.msra.mxu3 %v1146_v46 }
  0xc7   : > { %948 = vperm.xlu1 %2234, %v2681_v51   ;;  %v1145_v51 = vld [vmem:[%s3541_s5 + $0xc0] sm:$0xff] }
  0xc8   : > { %1257 = vmatpush.msra.mxu3 %v1145_v51 }
  0xc9   : > { %1041 = vperm.xlu2 %2235, %v2669_v47   ;;  %2245 = vset.pattern.permute.xlu0 %v2412_v62 }
  0xca   : > { %870 = vperm.xlu0 %2245, %v2712_v60   ;;  %1258 = vmatpush.msra.mxu3 %v1144_v58 }
  0xcc   : > { %1259 = vmatpush.msra.mxu3 %v1143_v2  ;;  %v1136_v2 = vld [vmem:[%s3541_s5 + $0x78] sm:$0xff] }
  0xcd   : > { %v2863_v38 = vpop.permute.xlu2 %762  ;;  %1185 = vmatpush.msra.mxu2 %v1136_v2  ;;  %v1129_v2 = vld [vmem:[%s3541_s5 + $0x40] sm:$0xff] }
  0xce   : > { %1260 = vmatpush.msra.mxu3 %v1142_v8 }
  0xcf   : > { %2237 = vset.pattern.permute.xlu1 %v2412_v62 }
  0xd0   : > { %858 = vperm.xlu1 %2237, %v2685_v52   ;;  %1261 = vmatpush.msra.mxu3 %v1141_v15 }
  0xd1   : > { %2238 = vset.pattern.permute.xlu2 %v2413_v5 }
  0xd2   : > { %951 = vperm.xlu2 %2238, %v2675_v49   ;;  %2248 = vset.pattern.permute.xlu0 %v2414_v11 }
  0xd3   : > { %1059 = vperm.xlu0 %2248, %v2701_v57   ;;  %1262 = vmatpush.msra.mxu3 %v1140_v21  ;;  %v3059_v21 = vld [vmem:[%s3541_s5 + $0x1a8] sm:$0xff] }
  0xd4   : > { %v2823_v23 = vpop.permute.xlu1 %744 }
  0xd5   : > { %v2831_v25 = vpop.permute.xlu0 %738  ;;  %v2906_v63 = vpop.permute.xlu2 %771  ;;  %1263 = vmatpush.msra.mxu3 %v1139_v32  ;;  %v3069_v32 = vld [vmem:[%s3541_s5 + $0x1a0] sm:$0xff] }
  0xd7   : > { %1264 = vmatpush.msra.mxu3 %v1138_v40 }
  0xd8   : > { %861 = vperm.xlu1 %2237, %v2697_v56  }
  0xda   : > { %954 = vperm.xlu2 %2238, %v2685_v52  }
  0xdb   : > { %2251 = vset.pattern.permute.xlu0 %v2412_v62 }
  0xdc   : > { %v2851_v31 = vpop.permute.xlu1 %747 }
  0xdd   : > { %v2866_v39 = vpop.permute.xlu0 %741 }
  0xde   : > { %v586_v33 = vpop.f32.mrf.mxu0  ;;  %v2970_v30 = vpop.permute.xlu2 %834 }
  0xdf   : > { %v587_v34 = vadd.f32 %v2843_v28, %v586_v33  ;;  %v1157_v33 = vld [vmem:[%s3541_s5 + $0x120] sm:$0xff] }
  0xe0   : > { %2240 = vset.pattern.permute.xlu1 %v2414_v11  ;;  %1326 = vmatpush.msrb.mxu0 %v1157_v33  ;;  %v1132_v33 = vld [vmem:[%s3541_s5 + $0x58] sm:$0xff] }
  0xe1   : > { %v634_v37 = vmax.f32 %v587_v34, 0.0  ;;  %1047 = vperm.xlu1 %2240, %v2675_v49  }
  0xe2   : > { %2241 = vset.pattern.permute.xlu2 %v2412_v62  ;;  %1327 = vmatpush.msrb.mxu0 %v1156_v43  ;;  %v1131_v43 = vld [vmem:[%s3541_s5 + $0x50] sm:$0xff] }
  0xe3   : > { %686 = vmatmul.f32.vlgmr.msra.gmra.mxu1 %v634_v37  ;;  %864 = vperm.xlu2 %2241, %v2691_v54  }
  0xe4   : > { %v2880_v44 = vpop.f32.mrf.mxu2  ;;  %v2882_v45 = vpop.permute.xlu1 %759  ;;  %1328 = vmatpush.msrb.mxu0 %v1155_v53 }
  0xe5   : > { %v622_v50 = vpop.f32.mrf.mxu3  ;;  %v2908_v0 = vpop.permute.xlu0 %756 }
  0xe6   : > { %v589_v47 = vpop.f32.mrf.mxu0  ;;  %v623_v19 = vadd.f32 %v2843_v28, %v622_v50  ;;  %1329 = vmatpush.msrb.mxu0 %v1154_v61  ;;  %v3105_v61 = vld [vmem:[%s3541_s5 + $0x188] sm:$0xff] }
  0xe7   : > { %v590_v49 = vadd.f32 %v2843_v28, %v589_v47  ;;  %v2999_v47 = vld [vmem:[%s3541_s5 + $0x1c8] sm:$0xff] }
  0xe8   : > { %v646_v36 = vmax.f32 %v623_v19, 0.0 }
  0xe9   : > { %v635_v55 = vmax.f32 %v590_v49, 0.0  ;;  %1050 = vperm.xlu1 %2240, %v2685_v52   ;;  %v2913_v52 = vld [vmem:[%s3541_s5 + $0x1f8] sm:$0xff]  ;;  %v1137_v49 = vld [vmem:[%s3541_s5 + $0x80] sm:$0xff] }
  0xea   : > { %1380 = vmatpush.msrb.mxu1 %v2913_v52  ;;  %1265 = vmatpush.msra.mxu3 %v1137_v49 }
  0xeb   : > { %689 = vmatmul.f32.gmra.mxu1 %v635_v55  ;;  %867 = vperm.xlu2 %2241, %v2701_v57   ;;  %v3013_v55 = vld [vmem:[%s3541_s5 + $0x1c0] sm:$0xff] }
  0xec   : > { %v619_v4 = vpop.f32.mrf.mxu2  ;;  %v2921_v6 = vpop.permute.xlu1 %768  ;;  %1381 = vmatpush.msrb.mxu1 %v2931_v9 }
  0xed   : > { %v620_v7 = vadd.f32 %v2843_v28, %v619_v4  ;;  %v625_v20 = vpop.f32.mrf.mxu3  ;;  %v2981_v37 = vpop.permute.xlu0 %765  ;;  %v1135_v4 = vld [vmem:[%s3541_s5 + $0x70] sm:$0xff] }
  0xee   : > { %v592_v10 = vpop.f32.mrf.mxu0  ;;  %1382 = vmatpush.msrb.mxu1 %v2944_v16  ;;  %v626_v51 = vadd.f32 %v2843_v28, %v625_v20  ;;  %1186 = vmatpush.msra.mxu2 %v1135_v4  ;;  %v2415_v20 = vmov 1.0   ;;  %v1128_v4 = vld [vmem:[%s3541_s5 + $0x38] sm:$0xff] }
  0xef   : > { %v645_v13 = vmax.f32 %v620_v7, 0.0  ;;  %v593_v14 = vadd.f32 %v2843_v28, %v592_v10  ;;  %v1153_v10 = vld [vmem:[%s3541_s5 + $0x100] sm:$0xff] }
  0xf0   : > { %1383 = vmatpush.msrb.mxu1 %v2959_v26  ;;  %v647_v7 = vmax.f32 %v626_v51, 0.0  ;;  %1330 = vmatpush.msrb.mxu0 %v1153_v10  ;;  %v1130_v51 = vld [vmem:[%s3541_s5 + $0x48] sm:$0xff] }
  0xf1   : > { %v636_v18 = vmax.f32 %v593_v14, 0.0  ;;  %719 = vmatmul.f32.vlgmr.msrb.gmra.mxu3 %v645_v13  ;;  %2243 = vset.pattern.permute.xlu1 %v2413_v5 }
  0xf2   : > { %960 = vperm.xlu1 %2243, %v2691_v54   ;;  %1384 = vmatpush.msrb.mxu1 %v2968_v29 }
  0xf3   : > { %692 = vmatmul.f32.gmra.mxu1 %v636_v18  ;;  %2244 = vset.pattern.permute.xlu2 %v2414_v11 }
  0xf4   : > { %v2979_v34 = vpop.permute.xlu1 %777  ;;  %1385 = vmatpush.msrb.mxu1 %v2989_v41  ;;  %1053 = vperm.xlu2 %2244, %v2697_v56   ;;  %v931_v56 = vpop.permute.xlu2 %930 }
  0xf5   : > { %v628_v58 = vpop.f32.mrf.mxu3  ;;  %v3048_v15 = vpop.permute.xlu0 %774  ;;  %1187 = vmatpush.msra.mxu2 %v1134_v17 }
  0xf6   : > { %v595_v42 = vpop.f32.mrf.mxu0  ;;  %1386 = vmatpush.msrb.mxu1 %v2999_v47  ;;  %v629_v19 = vadd.f32 %v2843_v28, %v628_v58 }
  0xf7   : > { %v596_v46 = vadd.f32 %v2843_v28, %v595_v42  ;;  %1188 = vmatpush.msra.mxu2 %v1133_v27  ;;  %v3080_v42 = vld [vmem:[%s3541_s5 + $0x198] sm:$0xff] }
  0xf8   : > { %1387 = vmatpush.msrb.mxu1 %v3013_v55  ;;  %v648_v40 = vmax.f32 %v629_v19, 0.0  ;;  %v1126_v19 = vld [vmem:[%s3541_s5 + $0x28] sm:$0xff] }
  0xf9   : > { %v637_v50 = vmax.f32 %v596_v46, 0.0  ;;  %722 = vmatmul.f32.gmra.mxu3 %v646_v36  ;;  %1189 = vmatpush.msra.mxu2 %v1132_v33 }
  0xfa   : > { %963 = vperm.xlu1 %2243, %v2701_v57   ;;  %v3029_v57 = vand.u32 127, %v735_v48  ;;  %1388 = vmatpush.msrb.mxu1 %v3027_v3 }
  0xfb   : > { %695 = vmatmul.f32.gmra.mxu1 %v637_v50  ;;  %v3092_v50 = vld [vmem:[%s3541_s5 + $0x190] sm:$0xff]  ;;  %1190 = vmatpush.msra.mxu2 %v1131_v43 }
  0xfc   : > { %vm977_vm2 = vcmp.eq.s32.totalorder %v931_v56, %v3029_v57  ;;  %1389 = vmatpush.msrb.mxu1 %v3043_v12  ;;  %v3074_v36 = vpop.permute.xlu2 %1026  ;;  %1056 = vperm.xlu2 %2244, %v2691_v54   ;;  %v3115_v56 = vld [vmem:[%s3541_s5 + $0x180] sm:$0xff]  ;;  %vm881_vm5 = vcmp.eq.s32.totalorder %v2970_v30, %v3029_v57 }
  0xfd   : > { %v3035_v8 = vpop.permute.xlu1 %837  ;;  %1957 = vmatmul.msk.f32.vlgmr.msrb.gmra.mxu0 %vm977_vm2, %v2415_v20  ;;  %v3099_v58 = vpop.permute.xlu0 %780  ;;  %1191 = vmatpush.msra.mxu2 %v1130_v51  ;;  %vm1073_vm7 = vcmp.eq.s32.totalorder %v3074_v36, %v3029_v57  ;;  %vm785_vm2 = vcmp.eq.s32.totalorder %v2831_v25, %v3029_v57 }
  0xfe   : > { %v598_v13 = vpop.f32.mrf.mxu0  ;;  %1390 = vmatpush.msrb.mxu1 %v3059_v21  ;;  %vm882_vm8 = vcmp.eq.s32.totalorder %v3035_v8, %v3029_v57 }
  0xff   : > { %v599_v14 = vadd.f32 %v2843_v28, %v598_v13  ;;  %1192 = vmatpush.msra.mxu2 %v1129_v2  ;;  %v1127_v13 = vld [vmem:[%s3541_s5 + $0x30] sm:$0xff]  ;;  %v1121_v2 = vld [vmem:[%s3541_s5] sm:$0xff] }
 0x100   : > { %1391 = vmatpush.msrb.mxu1 %v3069_v32 }
 0x101   : > { %v638_v18 = vmax.f32 %v599_v14, 0.0  ;;  %725 = vmatmul.f32.gmra.mxu3 %v647_v7  ;;  %1193 = vmatpush.msra.mxu2 %v1128_v4 }
 0x102   : > { %2246 = vset.pattern.permute.xlu1 %v2412_v62  ;;  %v631_v62 = vpop.f32.mrf.mxu3  ;;  %1392 = vmatpush.msrb.mxu1 %v3080_v42 }
 0x103   : > { %698 = vmatmul.f32.gmra.mxu1 %v638_v18  ;;  %873 = vperm.xlu1 %2246, %v2707_v59   ;;  %v632_v53 = vadd.f32 %v2843_v28, %v631_v62  ;;  %v1124_v62 = vld [vmem:[%s3541_s5 + $0x18] sm:$0xff] }
 0x104   : > { %1393 = vmatpush.msrb.mxu1 %v3092_v50  ;;  %v937_v7 = vpop.permute.xlu2 %936  ;;  %2247 = vset.pattern.permute.xlu2 %v2413_v5 }
 0x105   : > { %v649_v10 = vmax.f32 %v632_v53, 0.0  ;;  %vm979_vm4 = vcmp.eq.s32.totalorder %v937_v7, %v3029_v57  ;;  %966 = vperm.xlu2 %2247, %v2712_v60   ;;  %1194 = vmatpush.msra.mxu2 %v1127_v13 }
 0x106   : > { %v601_v46 = vpop.f32.mrf.mxu0  ;;  %v934_v48 = vpop.permute.xlu1 %933  ;;  %1394 = vmatpush.msrb.mxu1 %v3105_v61 }
 0x107   : > { %v602_v49 = vadd.f32 %v2843_v28, %v601_v46  ;;  %vm978_vm3 = vcmp.eq.s32.totalorder %v934_v48, %v3029_v57  ;;  %v3134_v33 = vpop.permute.xlu0 %840  ;;  %1195 = vmatpush.msra.mxu2 %v1126_v19  ;;  %v3146_v46 = vld [vmem:[%s2633_s23 + $0xf8] sm:$0xff]  ;;  %v1123_v48 = vld [vmem:[%s3541_s5 + $0x10] sm:$0xff] }
 0x108   : > { %1958 = vmatmul.msk.f32.gmra.mxu0 %vm978_vm3, %v2415_v20  ;;  %1395 = vmatpush.msrb.mxu1 %v3115_v56  ;;  %vm883_vm11 = vcmp.eq.s32.totalorder %v3134_v33, %v3029_v57 }
 0x109   : > { %v639_v54 = vmax.f32 %v602_v49, 0.0  ;;  %728 = vmatmul.f32.gmra.mxu3 %v648_v40  ;;  %v1125_v40 = vld [vmem:[%s3541_s5 + $0x20] sm:$0xff]  ;;  %879 = vperm.xlu0 %2251, %v3146_v46  }
 0x10a   : > { %1196 = vmatpush.msra.mxu2 %v1125_v40 }
 0x10b   : > { %701 = vmatmul.f32.gmra.mxu1 %v639_v54  ;;  %876 = vperm.xlu1 %2246, %v2727_v1  }
 0x10c   : > { %v940_v43 = vpop.permute.xlu2 %939  ;;  %1197 = vmatpush.msra.mxu2 %v1124_v62 }
 0x10d   : > { %vm980_vm6 = vcmp.eq.s32.totalorder %v940_v43, %v3029_v57  ;;  %969 = vperm.xlu2 %2247, %v2707_v59  }
 0x10e   : > { %v604_v14 = vpop.f32.mrf.mxu0  ;;  %1198 = vmatpush.msra.mxu2 %v1123_v48 }
 0x10f   : > { %v605_v17 = vadd.f32 %v2843_v28, %v604_v14  ;;  %v3128_v18 = vpop.permute.xlu1 %843  ;;  %v1030_v30 = vpop.permute.xlu0 %1029 }
 0x110   : > { %1959 = vmatmul.msk.f32.gmra.mxu0 %vm979_vm4, %v2415_v20  ;;  %vm1074_vm9 = vcmp.eq.s32.totalorder %v1030_v30, %v3029_v57  ;;  %vm884_vm13 = vcmp.eq.s32.totalorder %v3128_v18, %v3029_v57 }
 0x111   : > { %v640_v27 = vmax.f32 %v605_v17, 0.0  ;;  %731 = vmatmul.f32.gmra.mxu3 %v649_v10  ;;  %2256 = vset.pattern.permute.xlu0 %v2414_v11 }
 0x112   : > { %1068 = vperm.xlu0 %2256, %v2727_v1  }
 0x113   : > { %704 = vmatmul.f32.gmra.mxu1 %v640_v27  ;;  %2249 = vset.pattern.permute.xlu1 %v2414_v11 }
 0x114   : > { %1062 = vperm.xlu1 %2249, %v2712_v60   ;;  %v1122_v60 = vld [vmem:[%s3541_s5 + $0x8] sm:$0xff]  ;;  %v3170_v4 = vpop.permute.xlu2 %849 }
 0x115   : > { %1199 = vmatpush.msra.mxu2 %v1122_v60  ;;  %2250 = vset.pattern.permute.xlu2 %v2411_v35  ;;  %vm886_vm4 = vcmp.eq.s32.totalorder %v3170_v4, %v3029_v57 }
 0x116   : > { %v607_v49 = vpop.f32.mrf.mxu0  ;;  %783 = vperm.xlu2 %2250, %v3146_v46  }
 0x117   : > { %v608_v51 = vadd.f32 %v2843_v28, %v607_v49  ;;  %v3156_v54 = vpop.permute.xlu1 %846  ;;  %1200 = vmatpush.msra.mxu2 %v1121_v2 }
 0x118   : > { %1960 = vmatmul.msk.f32.gmra.mxu0 %vm980_vm6, %v2415_v20  ;;  %v943_v13 = vpop.permute.xlu0 %942  ;;  %vm885_vm0 = vcmp.eq.s32.totalorder %v3156_v54, %v3029_v57 }
 0x119   : > { %v641_v53 = vmax.f32 %v608_v51, 0.0  ;;  %1941 = vmatmul.msk.f32.vlgmr.msra.gmra.mxu3 %vm881_vm5, %v2415_v20  ;;  %vm981_vm10 = vcmp.eq.s32.totalorder %v943_v13, %v3029_v57 }
 0x11b   : > { %707 = vmatmul.f32.vlgmr.msrb.gmra.mxu2 %v641_v53  ;;  %1973 = vmatmul.msk.f32.vlgmr.msrb.gmra.mxu1 %vm1073_vm7, %v2415_v20  ;;  %vm786_vm7 = vcmp.eq.s32.totalorder %v2866_v39, %v3029_v57 }
 0x11c   : > { %2252 = vset.pattern.permute.xlu1 %v2413_v5  ;;  %2046 = vmatpush.msrb.mxu2 %v2913_v52 }
 0x11d   : > { %972 = vperm.xlu1 %2252, %v2727_v1   ;;  %v3188_v1 = vpop.permute.xlu2 %852 }
 0x11e   : > { %v610_v36 = vpop.f32.mrf.mxu0  ;;  %2047 = vmatpush.msrb.mxu2 %v2931_v9  ;;  %2253 = vset.pattern.permute.xlu2 %v2414_v11 }
 0x11f   : > { %v611_v7 = vadd.f32 %v2843_v28, %v610_v36  ;;  %1065 = vperm.xlu2 %2253, %v2707_v59  }
 0x120   : > { %v1033_v10 = vpop.permute.xlu1 %1032  ;;  %2048 = vmatpush.msrb.mxu2 %v2944_v16  ;;  %1961 = vmatmul.msk.f32.gmra.mxu0 %vm981_vm10, %v2415_v20 }
 0x121   : > { %v642_v52 = vmax.f32 %v611_v7, 0.0  ;;  %1942 = vmatmul.msk.f32.gmra.mxu3 %vm882_vm8, %v2415_v20  ;;  %vm1075_vm12 = vcmp.eq.s32.totalorder %v1033_v10, %v3029_v57  ;;  %vm887_vm8 = vcmp.eq.s32.totalorder %v3188_v1, %v3029_v57 }
 0x122   : > { %2049 = vmatpush.msrb.mxu2 %v2959_v26 }
 0x123   : > { %710 = vmatmul.f32.gmra.mxu2 %v642_v52  ;;  %1974 = vmatmul.msk.f32.gmra.mxu1 %vm1074_vm9, %v2415_v20 }
 0x124   : > { %2050 = vmatpush.msrb.mxu2 %v2968_v29  ;;  %v617_v29 = vadd.f32 %v2843_v28, %v2880_v44 }
 0x125   : > { %2254 = vset.pattern.permute.xlu1 %v2414_v11  ;;  %v1039_v26 = vpop.permute.xlu2 %1038 }
 0x126   : > { %v613_v35 = vpop.f32.mrf.mxu0  ;;  %1071 = vperm.xlu1 %2254, %v3146_v46   ;;  %2051 = vmatpush.msrb.mxu2 %v2989_v41  ;;  %v644_v59 = vmax.f32 %v617_v29, 0.0  ;;  %vm1077_vm1 = vcmp.eq.s32.totalorder %v1039_v26, %v3029_v57  ;;  %v856_v41 = vpop.permute.xlu0 %855 }
 0x127   : > { %v614_v9 = vadd.f32 %v2843_v28, %v613_v35  ;;  %2255 = vset.pattern.permute.xlu2 %v2413_v5 }
 0x128   : > { %v1036_v16 = vpop.permute.xlu1 %1035  ;;  %2052 = vmatpush.msrb.mxu2 %v2999_v47  ;;  %975 = vperm.xlu2 %2255, %v3146_v46  }
 0x129   : > { %v643_v8 = vmax.f32 %v614_v9, 0.0  ;;  %1943 = vmatmul.msk.f32.gmra.mxu3 %vm883_vm11, %v2415_v20  ;;  %vm1076_vm14 = vcmp.eq.s32.totalorder %v1036_v16, %v3029_v57  ;;  %vm787_vm11 = vcmp.eq.s32.totalorder %v2823_v23, %v3029_v57  ;;  %v3378_v9 = vld [vmem:[%s3540_s4] ss:$0 sm:$0xff] }
 0x12a   : > { %2053 = vmatpush.msrb.mxu2 %v3013_v55 }
 0x12b   : > { %713 = vmatmul.f32.gmra.mxu2 %v643_v8  ;;  %1975 = vmatmul.msk.f32.gmra.mxu1 %vm1075_vm12, %v2415_v20  ;;  %vm888_vm12 = vcmp.eq.s32.totalorder %v856_v41, %v3029_v57 }
 0x12c   : > { %2054 = vmatpush.msrb.mxu2 %v3027_v3 }
 0x12d   : > { %v1042_v28 = vpop.permute.xlu2 %1041 }
 0x12e   : > { %2055 = vmatpush.msrb.mxu2 %v3043_v12  ;;  %vm1078_vm5 = vcmp.eq.s32.totalorder %v1042_v28, %v3029_v57  ;;  %v1045_v55 = vpop.permute.xlu0 %1044 }
 0x12f   : > { %vm1079_vm9 = vcmp.eq.s32.totalorder %v1045_v55, %v3029_v57 }
 0x130   : > { %2056 = vmatpush.msrb.mxu2 %v3059_v21 }
 0x131   : > { %1944 = vmatmul.msk.f32.gmra.mxu3 %vm884_vm13, %v2415_v20  ;;  %v946_v11 = vpop.permute.xlu1 %945  ;;  %vm788_vm13 = vcmp.eq.s32.totalorder %v2851_v31, %v3029_v57 }
 0x132   : > { %vm982_vm15 = vcmp.eq.s32.totalorder %v946_v11, %v3029_v57  ;;  %2057 = vmatpush.msrb.mxu2 %v3069_v32 }
 0x133   : > { %716 = vmatmul.f32.gmra.mxu2 %v644_v59  ;;  %1976 = vmatmul.msk.f32.gmra.mxu1 %vm1076_vm14, %v2415_v20 }
 0x134   : > { %1962 = vmatmul.msk.f32.gmra.mxu0 %vm982_vm15, %v2415_v20  ;;  %2058 = vmatpush.msrb.mxu2 %v3080_v42 }
 0x135   : > { %v952_v44 = vpop.permute.xlu2 %951 }
 0x136   : > { %2059 = vmatpush.msrb.mxu2 %v3092_v50  ;;  %vm984_vm6 = vcmp.eq.s32.totalorder %v952_v44, %v3029_v57  ;;  %v958_v23 = vpop.permute.xlu0 %957 }
 0x138   : > { %2060 = vmatpush.msrb.mxu2 %v3105_v61 }
 0x139   : > { %1945 = vmatmul.msk.f32.gmra.mxu3 %vm885_vm0, %v2415_v20  ;;  %v949_v5 = vpop.permute.xlu1 %948  ;;  %vm986_vm0 = vcmp.eq.s32.totalorder %v958_v23, %v3029_v57 }
 0x13a   : > { %vm983_vm3 = vcmp.eq.s32.totalorder %v949_v5, %v3029_v57  ;;  %2061 = vmatpush.msrb.mxu2 %v3115_v56 }
 0x13b   : > { %1925 = vmatmul.msk.f32.vlgmr.msra.gmra.mxu2 %vm785_vm2, %v2415_v20  ;;  %1977 = vmatmul.msk.f32.gmra.mxu1 %vm1077_vm1, %v2415_v20  ;;  %vm789_vm1 = vcmp.eq.s32.totalorder %v2818_v22, %v3029_v57 }
 0x13c   : > { %1963 = vmatmul.msk.f32.gmra.mxu0 %vm983_vm3, %v2415_v20 }
 0x13d   : > { %v955_v47 = vpop.permute.xlu2 %954 }
 0x13e   : > { %vm985_vm10 = vcmp.eq.s32.totalorder %v955_v47, %v3029_v57  ;;  %v871_v61 = vpop.permute.xlu0 %870 }
 0x141   : > { %1946 = vmatmul.msk.f32.gmra.mxu3 %vm886_vm4, %v2415_v20  ;;  %vm790_vm4 = vcmp.eq.s32.totalorder %v2829_v24, %v3029_v57 }
 0x142   : > { %v859_v25 = vpop.permute.xlu1 %858 }
 0x143   : > { %1926 = vmatmul.msk.f32.gmra.mxu2 %vm786_vm7, %v2415_v20  ;;  %1978 = vmatmul.msk.f32.gmra.mxu1 %vm1078_vm5, %v2415_v20  ;;  %vm889_vm15 = vcmp.eq.s32.totalorder %v859_v25, %v3029_v57 }
 0x144   : > { %1964 = vmatmul.msk.f32.gmra.mxu0 %vm984_vm6, %v2415_v20 }
 0x145   : > { %v865_v3 = vpop.permute.xlu2 %864 }
 0x146   : > { %vm891_vm7 = vcmp.eq.s32.totalorder %v865_v3, %v3029_v57  ;;  %v1060_v18 = vpop.permute.xlu0 %1059 }
 0x149   : > { %1947 = vmatmul.msk.f32.gmra.mxu3 %vm887_vm8, %v2415_v20  ;;  %vm791_vm8 = vcmp.eq.s32.totalorder %v2908_v0, %v3029_v57 }
 0x14a   : > { %v862_v39 = vpop.permute.xlu1 %861 }
 0x14b   : > { %1927 = vmatmul.msk.f32.gmra.mxu2 %vm787_vm11, %v2415_v20  ;;  %1979 = vmatmul.msk.f32.gmra.mxu1 %vm1079_vm9, %v2415_v20  ;;  %vm890_vm3 = vcmp.eq.s32.totalorder %v862_v39, %v3029_v57 }
 0x14c   : > { %1965 = vmatmul.msk.f32.gmra.mxu0 %vm985_vm10, %v2415_v20 }
 0x14d   : > { %v868_v21 = vpop.permute.xlu2 %867 }
 0x14e   : > { %vm892_vm11 = vcmp.eq.s32.totalorder %v868_v21, %v3029_v57 }
 0x151   : > { %1948 = vmatmul.msk.f32.gmra.mxu3 %vm888_vm12, %v2415_v20  ;;  %vm792_vm12 = vcmp.eq.s32.totalorder %v2882_v45, %v3029_v57 }
 0x153   : > { %1928 = vmatmul.msk.f32.gmra.mxu2 %vm788_vm13, %v2415_v20  ;;  %v1048_v12 = vpop.permute.xlu1 %1047 }
 0x154   : > { %vm1080_vm14 = vcmp.eq.s32.totalorder %v1048_v12, %v3029_v57  ;;  %1966 = vmatmul.msk.f32.gmra.mxu0 %vm986_vm0, %v2415_v20  ;;  %vm793_vm0 = vcmp.eq.s32.totalorder %v2863_v38, %v3029_v57 }
 0x155   : > { %1980 = vmatmul.msk.f32.gmra.mxu1 %vm1080_vm14, %v2415_v20  ;;  %v1054_v32 = vpop.permute.xlu2 %1053  ;;  %vm893_vm14 = vcmp.eq.s32.totalorder %v871_v61, %v3029_v57 }
 0x156   : > { %vm1082_vm5 = vcmp.eq.s32.totalorder %v1054_v32, %v3029_v57 }
 0x159   : > { %1949 = vmatmul.msk.f32.gmra.mxu3 %vm889_vm15, %v2415_v20  ;;  %vm1084_vm15 = vcmp.eq.s32.totalorder %v1060_v18, %v3029_v57 }
 0x15b   : > { %1929 = vmatmul.msk.f32.gmra.mxu2 %vm789_vm1, %v2415_v20  ;;  %v1051_v31 = vpop.permute.xlu1 %1050 }
 0x15c   : > { %vm1081_vm2 = vcmp.eq.s32.totalorder %v1051_v31, %v3029_v57 }
 0x15d   : > { %1981 = vmatmul.msk.f32.gmra.mxu1 %vm1081_vm2, %v2415_v20  ;;  %v1057_v50 = vpop.permute.xlu2 %1056 }
 0x15e   : > { %vm1083_vm9 = vcmp.eq.s32.totalorder %v1057_v50, %v3029_v57 }
 0x160   : > { %v3281_v42 = vpop.f32.mrf.mxu1 }
 0x161   : > { %1950 = vmatmul.msk.f32.gmra.mxu3 %vm890_vm3, %v2415_v20  ;;  %vm794_vm3 = vcmp.eq.s32.totalorder %v2981_v37, %v3029_v57  ;;  %v688_v59 = vadd.f32 %v3378_v9, %v3281_v42 }
 0x163   : > { %1930 = vmatmul.msk.f32.gmra.mxu2 %vm790_vm4, %v2415_v20 }
 0x164   : > { %v961_v22 = vpop.permute.xlu1 %960 }
 0x165   : > { %vm987_vm6 = vcmp.eq.s32.totalorder %v961_v22, %v3029_v57  ;;  %1982 = vmatmul.msk.f32.gmra.mxu1 %vm1082_vm5, %v2415_v20  ;;  %v967_v56 = vpop.permute.xlu2 %966 }
 0x166   : > { %1967 = vmatmul.msk.f32.gmra.mxu0 %vm987_vm6, %v2415_v20  ;;  %vm989_vm13 = vcmp.eq.s32.totalorder %v967_v56, %v3029_v57  ;;  %vm795_vm6 = vcmp.eq.s32.totalorder %v2921_v6, %v3029_v57 }
 0x168   : > { %v3295_v0 = vpop.f32.mrf.mxu1 }
 0x169   : > { %1951 = vmatmul.msk.f32.gmra.mxu3 %vm891_vm7, %v2415_v20  ;;  %v691_v47 = vadd.f32 %v3378_v9, %v3295_v0 }
 0x16b   : > { %1931 = vmatmul.msk.f32.gmra.mxu2 %vm791_vm8, %v2415_v20 }
 0x16c   : > { %v964_v24 = vpop.permute.xlu1 %963 }
 0x16d   : > { %vm988_vm10 = vcmp.eq.s32.totalorder %v964_v24, %v3029_v57  ;;  %1983 = vmatmul.msk.f32.gmra.mxu1 %vm1083_vm9, %v2415_v20  ;;  %v970_v45 = vpop.permute.xlu2 %969 }
 0x16e   : > { %1968 = vmatmul.msk.f32.gmra.mxu0 %vm988_vm10, %v2415_v20  ;;  %vm990_vm1 = vcmp.eq.s32.totalorder %v970_v45, %v3029_v57  ;;  %vm796_vm10 = vcmp.eq.s32.totalorder %v2906_v63, %v3029_v57 }
 0x170   : > { %v3310_v19 = vpop.f32.mrf.mxu1 }
 0x171   : > { %1952 = vmatmul.msk.f32.gmra.mxu3 %vm892_vm11, %v2415_v20  ;;  %v694_v22 = vadd.f32 %v3378_v9, %v3310_v19 }
 0x173   : > { %1932 = vmatmul.msk.f32.gmra.mxu2 %vm792_vm12, %v2415_v20 }
 0x174   : > { %v3299_v14 = vpop.f32.mrf.mxu3 }
 0x175   : > { %v874_v17 = vpop.permute.xlu1 %873  ;;  %1984 = vmatmul.msk.f32.gmra.mxu1 %vm1084_vm15, %v2415_v20  ;;  %v784_v40 = vpop.permute.xlu2 %783  ;;  %vm799_vm15 = vcmp.eq.s32.totalorder %v3099_v58, %v3029_v57 }
 0x176   : > { %1969 = vmatmul.msk.f32.gmra.mxu0 %vm989_vm13, %v2415_v20  ;;  %vm894_vm2 = vcmp.eq.s32.totalorder %v874_v17, %v3029_v57  ;;  %vm797_vm13 = vcmp.eq.s32.totalorder %v3048_v15, %v3029_v57 }
 0x178   : > { %v3320_v38 = vpop.f32.mrf.mxu1 }
 0x179   : > { %1953 = vmatmul.msk.f32.gmra.mxu3 %vm893_vm14, %v2415_v20  ;;  %vm798_vm14 = vcmp.eq.s32.totalorder %v2979_v34, %v3029_v57  ;;  %v697_v17 = vadd.f32 %v3378_v9, %v3320_v38 }
 0x17a   : > { %v1332_v15 = vpop.f32.mrf.mxu0 }
 0x17b   : > { %1933 = vmatmul.msk.f32.gmra.mxu2 %vm793_vm0, %v2415_v20  ;;  %v880_v43 = vpop.permute.xlu0 %879  ;;  %vm800_vm0 = vcmp.eq.s32.totalorder %v784_v40, %v3029_v57 }
 0x17c   : > { %v3314_v33 = vpop.f32.mrf.mxu3  ;;  %vm896_vm8 = vcmp.eq.s32.totalorder %v880_v43, %v3029_v57 }
 0x17d   : > { %v877_v27 = vpop.permute.xlu1 %876  ;;  %v1066_v37 = vpop.permute.xlu2 %1065 }
 0x17e   : > { %1970 = vmatmul.msk.f32.gmra.mxu0 %vm990_vm1, %v2415_v20  ;;  %vm895_vm4 = vcmp.eq.s32.totalorder %v877_v27, %v3029_v57  ;;  %vm1086_vm7 = vcmp.eq.s32.totalorder %v1066_v37, %v3029_v57 }
 0x180   : > { %v3333_v49 = vpop.f32.mrf.mxu1 }
 0x181   : > { %1954 = vmatmul.msk.f32.gmra.mxu3 %vm894_vm2, %v2415_v20  ;;  %v700_v19 = vadd.f32 %v3378_v9, %v3333_v49 }
 0x183   : > { %1934 = vmatmul.msk.f32.gmra.mxu2 %vm794_vm3, %v2415_v20 }
 0x184   : > { %v3325_v46 = vpop.f32.mrf.mxu3  ;;  %v1069_v6 = vpop.permute.xlu0 %1068 }
 0x185   : > { %vm1087_vm11 = vcmp.eq.s32.totalorder %v1069_v6, %v3029_v57  ;;  %v976_v54 = vpop.permute.xlu2 %975  ;;  %v1335_v34 = vpop.f32.mrf.mxu0 }
 0x186   : > { %v1063_v62 = vpop.permute.xlu1 %1062  ;;  %vm992_vm12 = vcmp.eq.s32.totalorder %v976_v54, %v3029_v57 }
 0x187   : > { %vm1085_vm5 = vcmp.eq.s32.totalorder %v1063_v62, %v3029_v57 }
 0x188   : > { %1985 = vmatmul.msk.f32.gmra.mxu1 %vm1085_vm5, %v2415_v20  ;;  %v3350_v60 = vpop.f32.mrf.mxu1 }
 0x189   : > { %1955 = vmatmul.msk.f32.gmra.mxu3 %vm895_vm4, %v2415_v20 }
 0x18b   : > { %1935 = vmatmul.msk.f32.gmra.mxu2 %vm795_vm6, %v2415_v20 }
 0x18c   : > { %v3341_v51 = vpop.f32.mrf.mxu3 }
 0x18d   : > { %v1338_v16 = vpop.f32.mrf.mxu0 }
 0x18f   : > { %v973_v48 = vpop.permute.xlu1 %972 }
 0x190   : > { %1986 = vmatmul.msk.f32.gmra.mxu1 %vm1086_vm7, %v2415_v20  ;;  %vm991_vm9 = vcmp.eq.s32.totalorder %v973_v48, %v3029_v57  ;;  %v3360_v30 = vpop.f32.mrf.mxu1 }
 0x191   : > { %1971 = vmatmul.msk.f32.gmra.mxu0 %vm991_vm9, %v2415_v20  ;;  %1956 = vmatmul.msk.f32.gmra.mxu3 %vm896_vm8, %v2415_v20 }
 0x193   : > { %1936 = vmatmul.msk.f32.gmra.mxu2 %vm796_vm10, %v2415_v20 }
 0x194   : > { %v3353_v63 = vpop.f32.mrf.mxu3 }
 0x195   : > { %v1341_v44 = vpop.f32.mrf.mxu0 }
 0x198   : > { %1987 = vmatmul.msk.f32.gmra.mxu1 %vm1087_vm11, %v2415_v20  ;;  %v1397_v36 = vpop.f32.mrf.mxu1  ;;  %v1072_v52 = vpop.permute.xlu1 %1071 }
 0x199   : > { %1972 = vmatmul.msk.f32.gmra.mxu0 %vm992_vm12, %v2415_v20  ;;  %vm1088_vm1 = vcmp.eq.s32.totalorder %v1072_v52, %v3029_v57 }
 0x19b   : > { %1937 = vmatmul.msk.f32.gmra.mxu2 %vm797_vm13, %v2415_v20 }
 0x19c   : > { %v1267_v4 = vpop.f32.mrf.mxu3 }
 0x19d   : > { %v1344_v21 = vpop.f32.mrf.mxu0 }
 0x19e   : > { %v3355_v53 = vpop.f32.mrf.mxu2 }
 0x1a0   : > { %v1400_v13 = vpop.f32.mrf.mxu1 }
 0x1a3   : > { %1938 = vmatmul.msk.f32.gmra.mxu2 %vm798_vm14, %v2415_v20 }
 0x1a4   : > { %v1270_v10 = vpop.f32.mrf.mxu3 }
 0x1a6   : > { %v3362_v2 = vpop.f32.mrf.mxu2 }
 0x1a8   : > { %v1403_v26 = vpop.f32.mrf.mxu1 }
 0x1ab   : > { %1939 = vmatmul.msk.f32.gmra.mxu2 %vm799_vm15, %v2415_v20 }
 0x1ac   : > { %v1273_v58 = vpop.f32.mrf.mxu3 }
 0x1ae   : > { %v3367_v7 = vpop.f32.mrf.mxu2 }
 0x1b0   : > { %v1406_v25 = vpop.f32.mrf.mxu1 }
 0x1b1   : > { %v1347_v18 = vpop.f32.mrf.mxu0 }
 0x1b3   : > { %1940 = vmatmul.msk.f32.gmra.mxu2 %vm800_vm0, %v2415_v20 }
 0x1b4   : > { %v1276_v57 = vpop.f32.mrf.mxu3 }
 0x1b6   : > { %v3371_v1 = vpop.f32.mrf.mxu2 }
 0x1b8   : > { %v1409_v32 = vpop.f32.mrf.mxu1 }
 0x1bb   : > { %1988 = vmatmul.msk.f32.vlgmr.msrb.gmra.mxu2 %vm1088_vm1, %v2415_v20 }
 0x1bc   : > { %v1279_v12 = vpop.f32.mrf.mxu3 }
 0x1be   : > { %v1202_v35 = vpop.f32.mrf.mxu2 }
 0x1bf   : > { %v1268_v8 = vadd.f32 %v1267_v4, %v1202_v35  ;;  %v1350_v4 = vpop.f32.mrf.mxu0 }
 0x1c0   : > { %v1412_v27 = vpop.f32.mrf.mxu1 }
 0x1c1   : > { %v1333_v29 = vadd.f32 %v1332_v15, %v1268_v8 }
 0x1c3   : > { %v1398_v11 = vadd.f32 %v1397_v36, %v1333_v29  ;;  %v706_v29 = vadd.f32 %v3378_v9, %v3360_v30 }
 0x1c4   : > { %v1282_v56 = vpop.f32.mrf.mxu3 }
 0x1c5   : > { %v1445_v28 = vmul.f32 %v1398_v11, %v688_v59 }
 0x1c6   : > { %v1205_v5 = vpop.f32.mrf.mxu2 }
 0x1c7   : > { %1461 = vst [vmem:[%s3384_s10] sm:$0xff] %v1445_v28  ;;  %v1271_v20 = vadd.f32 %v1270_v10, %v1205_v5 }
 0x1c8   : > { %v1415_v54 = vpop.f32.mrf.mxu1 }
 0x1c9   : > { %v1336_v41 = vadd.f32 %v1335_v34, %v1271_v20  ;;  %v703_v34 = vadd.f32 %v3378_v9, %v3350_v60 }
 0x1cb   : > { %v1401_v55 = vadd.f32 %v1400_v13, %v1336_v41  ;;  %v709_v41 = vadd.f32 %v3378_v9, %v3355_v53 }
 0x1cc   : > { %v1285_v48 = vpop.f32.mrf.mxu3 }
 0x1cd   : > { %v1446_v39 = vmul.f32 %v1401_v55, %v691_v47 }
 0x1ce   : > { %v1208_v3 = vpop.f32.mrf.mxu2 }
 0x1cf   : > { %1462 = vst [vmem:[%s3384_s10 + $0x8] sm:$0xff] %v1446_v39  ;;  %v1274_v23 = vadd.f32 %v1273_v58, %v1208_v3  ;;  %v1353_v58 = vpop.f32.mrf.mxu0 }
 0x1d1   : > { %v1339_v31 = vadd.f32 %v1338_v16, %v1274_v23 }
 0x1d2   : > { %v1418_v16 = vpop.f32.mrf.mxu1 }
 0x1d3   : > { %v1404_v42 = vadd.f32 %v1403_v26, %v1339_v31 }
 0x1d4   : > { %v1288_v52 = vpop.f32.mrf.mxu3 }
 0x1d5   : > { %v1447_v50 = vmul.f32 %v1404_v42, %v694_v22 }
 0x1d6   : > { %v1211_v24 = vpop.f32.mrf.mxu2 }
 0x1d7   : > { %1463 = vst [vmem:[%s3384_s10 + $0x10] sm:$0xff] %v1447_v50  ;;  %v1277_v61 = vadd.f32 %v1276_v57, %v1211_v24  ;;  %v1356_v5 = vpop.f32.mrf.mxu0 }
 0x1d9   : > { %v1342_v0 = vadd.f32 %v1341_v44, %v1277_v61 }
 0x1da   : > { %v1421_v20 = vpop.f32.mrf.mxu1 }
 0x1db   : > { %v1407_v45 = vadd.f32 %v1406_v25, %v1342_v0 }
 0x1dc   : > { %v1291_v11 = vpop.f32.mrf.mxu3 }
 0x1dd   : > { %v1448_v40 = vmul.f32 %v1407_v45, %v697_v17 }
 0x1de   : > { %v1214_v62 = vpop.f32.mrf.mxu2 }
 0x1df   : > { %1464 = vst [vmem:[%s3384_s10 + $0x18] sm:$0xff] %v1448_v40  ;;  %v1280_v43 = vadd.f32 %v1279_v12, %v1214_v62  ;;  %v1359_v3 = vpop.f32.mrf.mxu0  ;;  %v718_v62 = vadd.f32 %v3378_v9, %v3371_v1 }
 0x1e1   : > { %v1345_v37 = vadd.f32 %v1344_v21, %v1280_v43  ;;  %v712_v21 = vadd.f32 %v3378_v9, %v3362_v2 }
 0x1e2   : > { %v1424_v12 = vpop.f32.mrf.mxu1 }
 0x1e3   : > { %v1410_v6 = vadd.f32 %v1409_v32, %v1345_v37 }
 0x1e4   : > { %v1294_v39 = vpop.f32.mrf.mxu3 }
 0x1e5   : > { %v1449_v15 = vmul.f32 %v1410_v6, %v700_v19 }
 0x1e6   : > { %v1217_v36 = vpop.f32.mrf.mxu2 }
 0x1e7   : > { %1465 = vst [vmem:[%s3384_s10 + $0x20] sm:$0xff] %v1449_v15  ;;  %v1283_v38 = vadd.f32 %v1282_v56, %v1217_v36  ;;  %v1362_v53 = vpop.f32.mrf.mxu0  ;;  %v715_v56 = vadd.f32 %v3378_v9, %v3367_v7 }
 0x1e9   : > { %v1348_v10 = vadd.f32 %v1347_v18, %v1283_v38 }
 0x1ea   : > { %v1427_v61 = vpop.f32.mrf.mxu1 }
 0x1eb   : > { %v1413_v13 = vadd.f32 %v1412_v27, %v1348_v10 }
 0x1ec   : > { %v1297_v42 = vpop.f32.mrf.mxu3 }
 0x1ed   : > { %v1450_v35 = vmul.f32 %v1413_v13, %v703_v34  ;;  %v724_v13 = vadd.f32 %v3378_v9, %v3314_v33 }
 0x1ee   : > { %v1220_v49 = vpop.f32.mrf.mxu2 }
 0x1ef   : > { %1466 = vst [vmem:[%s3384_s10 + $0x28] sm:$0xff] %v1450_v35  ;;  %v1286_v8 = vadd.f32 %v1285_v48, %v1220_v49  ;;  %v1365_v43 = vpop.f32.mrf.mxu0 }
 0x1f1   : > { %v1351_v26 = vadd.f32 %v1350_v4, %v1286_v8  ;;  %v721_v4 = vadd.f32 %v3378_v9, %v3299_v14 }
 0x1f2   : > { %v1430_v40 = vpop.f32.mrf.mxu1 }
 0x1f3   : > { %v1416_v59 = vadd.f32 %v1415_v54, %v1351_v26 }
 0x1f4   : > { %v1300_v27 = vpop.f32.mrf.mxu3 }
 0x1f5   : > { %v1451_v57 = vmul.f32 %v1416_v59, %v706_v29  ;;  %v727_v59 = vadd.f32 %v3378_v9, %v3325_v46 }
 0x1f6   : > { %v1223_v28 = vpop.f32.mrf.mxu2 }
 0x1f7   : > { %1467 = vst [vmem:[%s3384_s10 + $0x30] sm:$0xff] %v1451_v57  ;;  %v1289_v60 = vadd.f32 %v1288_v52, %v1223_v28  ;;  %v1368_v15 = vpop.f32.mrf.mxu0 }
 0x1f9   : > { %v1354_v44 = vadd.f32 %v1353_v58, %v1289_v60 }
 0x1fb   : > { %v1419_v25 = vadd.f32 %v1418_v16, %v1354_v44 }
 0x1fc   : > { %v1303_v54 = vpop.f32.mrf.mxu3 }
 0x1fd   : > { %v1452_v47 = vmul.f32 %v1419_v25, %v709_v41  ;;  %v730_v41 = vadd.f32 %v3378_v9, %v3341_v51 }
 0x1fe   : > { %v1226_v55 = vpop.f32.mrf.mxu2 }
 0x1ff   : > { %1468 = vst [vmem:[%s3384_s10 + $0x38] sm:$0xff] %v1452_v47  ;;  %v1292_v30 = vadd.f32 %v1291_v11, %v1226_v55  ;;  %v1371_v16 = vpop.f32.mrf.mxu0 }
 0x201   : > { %v1357_v23 = vadd.f32 %v1356_v5, %v1292_v30 }
 0x203   : > { %v1422_v31 = vadd.f32 %v1421_v20, %v1357_v23  ;;  %v733_v23 = vadd.f32 %v3378_v9, %v3353_v63 }
 0x204   : > { %v1306_v58 = vpop.f32.mrf.mxu3 }
 0x205   : > { %v1453_v32 = vmul.f32 %v1422_v31, %v712_v21  ;;  %v1433_v38 = vpop.f32.mrf.mxu1 }
 0x206   : > { %v1229_v22 = vpop.f32.mrf.mxu2 }
 0x207   : > { %1469 = vst [vmem:[%s3384_s10 + $0x40] sm:$0xff] %v1453_v32  ;;  %v1295_v50 = vadd.f32 %v1294_v39, %v1229_v22 }
 0x209   : > { %v1360_v24 = vadd.f32 %v1359_v3, %v1295_v50 }
 0x20b   : > { %v1425_v0 = vadd.f32 %v1424_v12, %v1360_v24 }
 0x20c   : > { %v1309_v57 = vpop.f32.mrf.mxu3 }
 0x20d   : > { %v1454_v17 = vmul.f32 %v1425_v0, %v715_v56  ;;  %v1436_v26 = vpop.f32.mrf.mxu1 }
 0x20e   : > { %v1232_v18 = vpop.f32.mrf.mxu2  ;;  %v1374_v60 = vpop.f32.mrf.mxu0 }
 0x20f   : > { %1470 = vst [vmem:[%s3384_s10 + $0x48] sm:$0xff] %v1454_v17  ;;  %v1298_v45 = vadd.f32 %v1297_v42, %v1232_v18 }
 0x211   : > { %v1363_v2 = vadd.f32 %v1362_v53, %v1298_v45 }
 0x213   : > { %v1428_v37 = vadd.f32 %v1427_v61, %v1363_v2 }
 0x214   : > { %v1312_v39 = vpop.f32.mrf.mxu3 }
 0x215   : > { %v1455_v19 = vmul.f32 %v1428_v37, %v718_v62  ;;  %v1439_v20 = vpop.f32.mrf.mxu1 }
 0x216   : > { %v1235_v48 = vpop.f32.mrf.mxu2  ;;  %v1377_v46 = vpop.f32.mrf.mxu0 }
 0x217   : > { %1471 = vst [vmem:[%s3384_s10 + $0x50] sm:$0xff] %v1455_v19  ;;  %v1301_v6 = vadd.f32 %v1300_v27, %v1235_v48 }
 0x219   : > { %v1366_v7 = vadd.f32 %v1365_v43, %v1301_v6 }
 0x21b   : > { %v1431_v36 = vadd.f32 %v1430_v40, %v1366_v7 }
 0x21d   : > { %v1456_v10 = vmul.f32 %v1431_v36, %v721_v4 }
 0x21e   : > { %v1238_v34 = vpop.f32.mrf.mxu2 }
 0x21f   : > { %1472 = vst [vmem:[%s3384_s10 + $0x58] sm:$0xff] %v1456_v10  ;;  %v1304_v52 = vadd.f32 %v1303_v54, %v1238_v34 }
 0x221   : > { %v1369_v1 = vadd.f32 %v1368_v15, %v1304_v52 }
 0x223   : > { %v1434_v35 = vadd.f32 %v1433_v38, %v1369_v1 }
 0x225   : > { %v1457_v49 = vmul.f32 %v1434_v35, %v724_v13 }
 0x226   : > { %v1241_v8 = vpop.f32.mrf.mxu2 }
 0x227   : > { %1473 = vst [vmem:[%s3384_s10 + $0x60] sm:$0xff] %v1457_v49  ;;  %v1307_v14 = vadd.f32 %v1306_v58, %v1241_v8 }
 0x229   : > { %v1372_v29 = vadd.f32 %v1371_v16, %v1307_v14 }
 0x22b   : > { %v1437_v11 = vadd.f32 %v1436_v26, %v1372_v29 }
 0x22d   : > { %v1458_v28 = vmul.f32 %v1437_v11, %v727_v59 }
 0x22e   : > { %v1244_v5 = vpop.f32.mrf.mxu2 }
 0x22f   : > { %1474 = vst [vmem:[%s3384_s10 + $0x68] sm:$0xff] %v1458_v28  ;;  %v1310_v33 = vadd.f32 %v1309_v57, %v1244_v5 }
 0x231   : > { %v1375_v44 = vadd.f32 %v1374_v60, %v1310_v33 }
 0x233   : > { %v1440_v25 = vadd.f32 %v1439_v20, %v1375_v44 }
 0x235   : > { %v1459_v47 = vmul.f32 %v1440_v25, %v730_v41 }
 0x236   : > { %v1247_v55 = vpop.f32.mrf.mxu2 }
 0x237   : > { %1475 = vst [vmem:[%s3384_s10 + $0x70] sm:$0xff] %v1459_v47  ;;  %v1313_v3 = vadd.f32 %v1312_v39, %v1247_v55 }
 0x239   : > { %v1378_v30 = vadd.f32 %v1377_v46, %v1313_v3 }
 0x23e   : > { %v1442_v12 = vpop.f32.mrf.mxu2 }
 0x23f   : > { %v1443_v21 = vadd.f32 %v1442_v12, %v1378_v30  ;;  %1483 = sbr.rel (!%p2482_p5) target bundleno = 628 (0x274), region = 100 }
 0x241   : > { %v1460_v31 = vmul.f32 %v1443_v21, %v733_v23 }
 0x243   : > { %1476 = vst [vmem:[%s3384_s10 + $0x78] sm:$0xff] %v1460_v31 }
 0x244   : > { %s3564_s11 = smov (!%p1486_p4, %s1485_s11), 16 }
 0x245   : > { %s1991_s27 = sshll.u32 %s3564_s11, 3 }
 0x246   : > { %p1994_p6 = scmp.eq.s32.totalorder %s1991_s27, 0 }
 0x247   : > { %s3445_s29 = sshrl.u32 (!%p1994_p6), %s3564_s11, 4 }
 0x248   : > { %1494 = sbr.rel (%p1994_p6) target bundleno = 628 (0x274), region = 104  ;;  %p1995_p5 = scmp.le.s32.totalorder (!%p1994_p6), %s3445_s29, 0 }
 0x24d   : > { %1763 = sbr.rel (%p1995_p5) target bundleno = 611 (0x263), region = 216  ;;  %s3549_s24 = smov (!%p1995_p5), %s3439_s26 }
 0x24e   : > { %s3550_s20 = smov (!%p1995_p5), %s3384_s10  ;;  %s3454_s9 = smov (!%p1995_p5), 0  }
 0x24f   : > { %s3456_s13 = smov (!%p1995_p5), 0  }
 0x252 LB: >> { %v1587_v51 = vld [vmem:[%s2385_s20] sm:$0xff]  ;;  %v1589_v63 = vld [vmem:[%s2385_s20 + $0x8] sm:$0xff]  ;;  %v1591_v9 = vld [vmem:[%s2385_s20 + $0x10] sm:$0xff]  ;;  %s1619_s15 = sadd.s32 1, %s2389_s9  ;;  %s1581_s13 = sadd.s32 1, %s2393_s13   ;;  %s2393_s13 = sphi %s3456_s13, %s1581_s13   ;;  %s2389_s9 = sphi %s3454_s9, %s3553_s9   ;;  %s2385_s20 = sphi %s3550_s20, %s3552_s20   ;;  %s2381_s24 = sphi %s3549_s24, %s3551_s24  }
 0x253   : >> { %1588 = vst [vmem:[%s2381_s24] sm:$0xff] %v1587_v51  ;;  %v1593_v32 = vld [vmem:[%s2385_s20 + $0x18] sm:$0xff]  ;;  %p1620_p7 = scmp.ge.s32.totalorder %s1619_s15, %s3445_s29  ;;  %v1595_v22 = vld [vmem:[%s2385_s20 + $0x20] sm:$0xff]  ;;  %v1597_v42 = vld [vmem:[%s2385_s20 + $0x28] sm:$0xff]  ;;  %p1580_p8 = scmp.ge.s32.totalorder %s1581_s13, %s3445_s29 }
 0x254   : >> { %1590 = vst [vmem:[%s2381_s24 + $0x8] sm:$0xff] %v1589_v63  ;;  %v1599_v50 = vld [vmem:[%s2385_s20 + $0x30] sm:$0xff]  ;;  %v1601_v53 = vld [vmem:[%s2385_s20 + $0x38] sm:$0xff]  ;;  %v1603_v24 = vld [vmem:[%s2385_s20 + $0x40] sm:$0xff] }
 0x255   : >> { %1592 = vst [vmem:[%s2381_s24 + $0x10] sm:$0xff] %v1591_v9  ;;  %s3566_s15 = smov (%p1620_p7, %s1619_s15), 0  ;;  %v1605_v61 = vld [vmem:[%s2385_s20 + $0x48] sm:$0xff]  ;;  %v1607_v56 = vld [vmem:[%s2385_s20 + $0x50] sm:$0xff]  ;;  %v1609_v0 = vld [vmem:[%s2385_s20 + $0x58] sm:$0xff] }
 0x256   : >> { %1594 = vst [vmem:[%s2381_s24 + $0x18] sm:$0xff] %v1593_v32  ;;  %s1996_s16 = sshll.u32 %s3566_s15, 7  ;;  %v1611_v17 = vld [vmem:[%s2385_s20 + $0x60] sm:$0xff]  ;;  %v1613_v18 = vld [vmem:[%s2385_s20 + $0x68] sm:$0xff]  ;;  %v1615_v45 = vld [vmem:[%s2385_s20 + $0x70] sm:$0xff]  ;;  %s3553_s9 = smov %s3566_s15 }
 0x257   : >> { %1596 = vst [vmem:[%s2381_s24 + $0x20] sm:$0xff] %v1595_v22  ;;  %s1624_s23 = scalar_lea.vmem %s3384_s10, %s1996_s16 [#allocation3]   ;;  %s1625_s18 = scalar_lea.vmem %s3439_s26, %s1996_s16   ;;  %v1617_v27 = vld [vmem:[%s2385_s20 + $0x78] sm:$0xff] }
 0x258   : >> { %1598 = vst [vmem:[%s2381_s24 + $0x28] sm:$0xff] %v1597_v42  ;;  %s3552_s20 = smov %s1624_s23 }
 0x259   : >> { %1600 = vst [vmem:[%s2381_s24 + $0x30] sm:$0xff] %v1599_v50 }
 0x25a   : >> { %1602 = vst [vmem:[%s2381_s24 + $0x38] sm:$0xff] %v1601_v53 }
 0x25b   : >> { %1604 = vst [vmem:[%s2381_s24 + $0x40] sm:$0xff] %v1603_v24 }
 0x25c   : >> { %1606 = vst [vmem:[%s2381_s24 + $0x48] sm:$0xff] %v1605_v61 }
 0x25d   : >> { %1608 = vst [vmem:[%s2381_s24 + $0x50] sm:$0xff] %v1607_v56 }
 0x25e   : >> { %1610 = vst [vmem:[%s2381_s24 + $0x58] sm:$0xff] %v1609_v0  ;;  %1583 = sbr.rel (!%p1580_p8) target bundleno = 594 (0x252), region = 222 }
 0x25f   : >> { %1612 = vst [vmem:[%s2381_s24 + $0x60] sm:$0xff] %v1611_v17 }
 0x260   : >> { %1614 = vst [vmem:[%s2381_s24 + $0x68] sm:$0xff] %v1613_v18 }
 0x261   : >> { %1616 = vst [vmem:[%s2381_s24 + $0x70] sm:$0xff] %v1615_v45 }
 0x262   : >> { %1618 = vst [vmem:[%s2381_s24 + $0x78] sm:$0xff] %v1617_v27  ;;  %s3551_s24 = smov %s1625_s18 }
 0x263 PF: > { %s3518_s19 = sand.u32 15, %s3564_s11   ;;  %s2010_s30 = sshll.u32 %s3445_s29, 7 }
 0x264   : > { %s1630_s7 = scalar_lea.vmem %s3384_s10, %s2010_s30 [#allocation3]   ;;  %s1632_s8 = scalar_lea.vmem %s3439_s26, %s2010_s30  }
 0x265   : > { %p2001_p9 = scmp.le.s32.totalorder %s3518_s19, 0 }
 0x266   : > { %s2395_s21 = smov (!%p2001_p9), %s1632_s8   ;;  %s2399_s17 = smov (!%p2001_p9), %s1630_s7  }
 0x267   : > { %1777 = sbr.rel (%p2001_p9) target bundleno = 628 (0x274), region = 227  ;;  %s2403_s12 = smov (!%p2001_p9), 0  }
 0x268   : > { %s2407_s14 = smov (!%p2001_p9), 0  }
 0x26c LB: >> { %v1642_v2 = vld [vmem:[%s2401_s17] sm:$0xff]  ;;  %s1644_s11 = sadd.s32 1, %s2405_s12  ;;  %s1636_s14 = sadd.s32 1, %s2409_s14   ;;  %s2409_s14 = sphi %s2407_s14, %s1636_s14   ;;  %s2405_s12 = sphi %s2403_s12, %s2404_s12   ;;  %s2401_s17 = sphi %s2399_s17, %s1649_s17   ;;  %s2397_s21 = sphi %s2395_s21, %s1650_s21  }
 0x26d   : >> { %1643 = vst [vmem:[%s2397_s21] sm:$0xff] %v1642_v2  ;;  %p1645_p10 = scmp.ge.s32.totalorder %s1644_s11, %s3518_s19  ;;  %p1635_p11 = scmp.ge.s32.totalorder %s1636_s14, %s3518_s19 }
 0x26f   : >> { %s3568_s11 = smov (%p1645_p10, %s1644_s11), 0  ;;  %1638 = sbr.rel (!%p1635_p11) target bundleno = 620 (0x26c), region = 233 }
 0x270   : >> { %s2002_s10 = sshll.u32 %s3568_s11, 3  ;;  %s2404_s12 = smov %s3568_s11  }
 0x271   : >> { %s1649_s17 = scalar_lea.vmem %s1630_s7, %s2002_s10 [#allocation3]   ;;  %s1650_s21 = scalar_lea.vmem %s1632_s8, %s2002_s10  }
 0x274 PF: > { %p13_p12 = scmp.ge.s32.totalorder %s2470_s25, 6   ;;  %s3554_s21 = smov %s2341_s22 }
 0x275   : > { %s3555_s22 = smov %s2480_s28  ;;  %s3556_s23 = smov %s2470_s25 }
 0x276   :  { %15 = sbr.rel (!%p13_p12) target bundleno = 2 (0x2), region = 244 }

</bundles_post_ra>
